<compile_context>
chip_gen: v7x
topology: tpu7x:2x2x1
jax: 0.10.0
libtpu: 0.0.40
codegen_flags: <defaults>
</compile_context>

<pallas_src>
import functools
import math

import jax
import jax.numpy as jnp
from jax.experimental import pallas as pl
from jax.experimental.pallas import tpu as pltpu

D_MODEL = 32
N_HEADS = 4
D_HEAD = D_MODEL // N_HEADS
D_FF = 64
N_LAYERS = 2
EPS = 1e-6

_WEIGHT_ORDER = (
    "wqkv", "bqkv", "wo", "bo", "w1", "b1", "w2", "b2",
    "ln1_g", "ln1_b", "ln2_g", "ln2_b", "norm_g", "norm_b",
)


# ------------------------- fused encoder-stack kernel -------------------------
def _encoder_kernel(
    x_ref, m_ref,
    wqkv_ref, bqkv_ref, wo_ref, bo_ref, w1_ref, b1_ref, w2_ref, b2_ref,
    ln1g_ref, ln1b_ref, ln2g_ref, ln2b_ref, lng_ref, lnb_ref,
    o_ref, *, n_layers, n_heads, eps,
):
    S, D = x_ref.shape[1], x_ref.shape[2]
    Dh = D // n_heads
    scale = 1.0 / math.sqrt(Dh)

    x = x_ref[0].astype(jnp.float32)     # (S, D) activations for this batch elem
    key_mask = m_ref[0]                   # (1, S) key-padding mask, bcast over rows

    def layer_norm(t, g, b):
        # Reference LayerNorm: unbiased std (divide by D-1), eps added to std.
        mean = jnp.mean(t, axis=-1, keepdims=True)
        diff = t - mean
        var = jnp.sum(diff * diff, axis=-1, keepdims=True) * (1.0 / (D - 1))
        inv = pl.reciprocal(jnp.sqrt(var) + eps, approx=True)
        return g * diff * inv + b

    # TODO(synk): dropout in SublayerConnection / attention / FFN omitted
    # (eval mode => identity).
    for l in range(n_layers):             # static unroll (N_LAYERS = 2)
        # ---------- sublayer 1: x + self_attn(norm(x), mask) ----------
        xn = layer_norm(x, ln1g_ref[l], ln1b_ref[l])
        qkv = (
            jnp.dot(xn, wqkv_ref[l], preferred_element_type=jnp.float32)
            + bqkv_ref[l]
        )                                  # (S, 3D) — fused Q/K/V projection
        attn = jnp.zeros((S, D), jnp.float32)
        for h in range(n_heads):           # static unroll (N_HEADS = 4)
            qh = qkv[:, h * Dh:(h + 1) * Dh]
            kh = qkv[:, D + h * Dh:D + (h + 1) * Dh]
            vh = qkv[:, 2 * D + h * Dh:2 * D + (h + 1) * Dh]
            s = jax.lax.dot_general(
                qh, kh, (((1,), (1,)), ((), ())),
                preferred_element_type=jnp.float32,
            ) * scale                      # (S, S)
            s = jnp.where(key_mask == 0, jnp.float32(-1e9), s)
            s = s - jnp.max(s, axis=-1, keepdims=True)
            p = jnp.exp(s)
            p = p * pl.reciprocal(jnp.sum(p, axis=-1, keepdims=True), approx=True)
            oh = jnp.dot(p, vh, preferred_element_type=jnp.float32)   # (S, Dh)
            # concat(heads) @ Wo  ==  sum_h  head_h @ Wo[h*Dh:(h+1)*Dh, :]
            attn = attn + jnp.dot(
                oh, wo_ref[l, h * Dh:(h + 1) * Dh, :],
                preferred_element_type=jnp.float32,
            )
        x = x + attn + bo_ref[l]

        # ---------- sublayer 2: x + W2 relu(W1 norm(x)) ----------
        xn2 = layer_norm(x, ln2g_ref[l], ln2b_ref[l])
        hid = jnp.dot(xn2, w1_ref[l], preferred_element_type=jnp.float32) + b1_ref[l]
        hid = jnp.maximum(hid, 0.0)
        ff = jnp.dot(hid, w2_ref[l], preferred_element_type=jnp.float32) + b2_ref[l]
        x = x + ff

    # final Encoder LayerNorm
    o_ref[0] = layer_norm(x, lng_ref[0], lnb_ref[0]).astype(o_ref.dtype)


def encoder(x, mask, params):
    B, S, D = x.shape
    weights = [params[name] for name in _WEIGHT_ORDER]
    kernel = functools.partial(
        _encoder_kernel, n_layers=N_LAYERS, n_heads=N_HEADS, eps=EPS
    )
    return pl.pallas_call(
        kernel,
        out_shape=jax.ShapeDtypeStruct((B, S, D), x.dtype),
        grid=(B,),
        in_specs=[
            pl.BlockSpec((1, S, D), lambda b: (b, 0, 0)),
            pl.BlockSpec((1, 1, S), lambda b: (b, 0, 0)),
        ] + [pl.BlockSpec(w.shape, lambda b: (0, 0, 0)) for w in weights],
        out_specs=pl.BlockSpec((1, S, D), lambda b: (b, 0, 0)),
        compiler_params=pltpu.CompilerParams(
            dimension_semantics=("parallel",),
        ),
    )(x, mask, *weights)


# ------------------------------ parameter init ------------------------------
def init_params(key):
    def nrm(k, shape):
        return jax.random.normal(k, shape, jnp.float32) * 0.05

    wqkv, wo, w1, w2 = [], [], [], []
    for i in range(N_LAYERS):
        ks = jax.random.split(jax.random.fold_in(key, i), 6)
        wq, wk, wv = (nrm(ks[j], (D_MODEL, D_MODEL)) for j in range(3))
        wqkv.append(jnp.concatenate([wq, wk, wv], axis=1))
        wo.append(nrm(ks[3], (D_MODEL, D_MODEL)))
        w1.append(nrm(ks[4], (D_MODEL, D_FF)))
        w2.append(nrm(ks[5], (D_FF, D_MODEL)))

    return {
        "wqkv": jnp.stack(wqkv),
        "bqkv": jnp.zeros((N_LAYERS, 1, 3 * D_MODEL), jnp.float32),
        "wo": jnp.stack(wo),
        "bo": jnp.zeros((N_LAYERS, 1, D_MODEL), jnp.float32),
        "w1": jnp.stack(w1),
        "b1": jnp.zeros((N_LAYERS, 1, D_FF), jnp.float32),
        "w2": jnp.stack(w2),
        "b2": jnp.zeros((N_LAYERS, 1, D_MODEL), jnp.float32),
        "ln1_g": jnp.ones((N_LAYERS, 1, D_MODEL), jnp.float32),
        "ln1_b": jnp.zeros((N_LAYERS, 1, D_MODEL), jnp.float32),
        "ln2_g": jnp.ones((N_LAYERS, 1, D_MODEL), jnp.float32),
        "ln2_b": jnp.zeros((N_LAYERS, 1, D_MODEL), jnp.float32),
        "norm_g": jnp.ones((1, 1, D_MODEL), jnp.float32),
        "norm_b": jnp.zeros((1, 1, D_MODEL), jnp.float32),
    }


# --------------------------- pure-JAX reference ---------------------------
def encoder_reference(x, mask, params):
    B, S, D = x.shape
    Dh = D // N_HEADS

    def ln(t, g, b):
        mean = t.mean(-1, keepdims=True)
        std = jnp.sqrt(((t - mean) ** 2).sum(-1, keepdims=True) / (D - 1))
        return g * (t - mean) / (std + EPS) + b

    for l in range(N_LAYERS):
        xn = ln(x, params["ln1_g"][l, 0], params["ln1_b"][l, 0])
        qkv = xn @ params["wqkv"][l] + params["bqkv"][l, 0]
        q, k, v = qkv[..., :D], qkv[..., D:2 * D], qkv[..., 2 * D:]

        def heads(t):
            return t.reshape(B, S, N_HEADS, Dh).transpose(0, 2, 1, 3)

        qh, kh, vh = heads(q), heads(k), heads(v)
        s = jnp.einsum("bhqd,bhkd->bhqk", qh, kh) / math.sqrt(Dh)
        s = jnp.where(mask[:, None, :, :] == 0, -1e9, s)
        p = jax.nn.softmax(s, axis=-1)
        o = jnp.einsum("bhqk,bhkd->bhqd", p, vh)
        o = o.transpose(0, 2, 1, 3).reshape(B, S, D)
        x = x + o @ params["wo"][l] + params["bo"][l, 0]

        xn2 = ln(x, params["ln2_g"][l, 0], params["ln2_b"][l, 0])
        hid = jnp.maximum(xn2 @ params["w1"][l] + params["b1"][l, 0], 0.0)
        x = x + hid @ params["w2"][l] + params["b2"][l, 0]

    return ln(x, params["norm_g"][0, 0], params["norm_b"][0, 0])


if __name__ == "__main__":
    key = jax.random.PRNGKey(0)
    B, S = 2, 8
    x = jax.random.normal(jax.random.fold_in(key, 100), (B, S, D_MODEL), jnp.float32)
    # key-padding mask (B, 1, S): 1 = attend, 0 = masked (last 2 keys of batch 1)
    mask = jnp.ones((B, 1, S), jnp.float32).at[1, 0, S - 2:].set(0.0)

    params = init_params(key)
    out = jax.block_until_ready(encoder(x, mask, params))
    ref = jax.block_until_ready(encoder_reference(x, mask, params))

    assert out.shape == (B, S, D_MODEL)
    assert bool(jnp.all(jnp.isfinite(out)))
    assert bool(jnp.allclose(out, ref, atol=1e-2, rtol=1e-2))
    print("KERNEL_OK")
</pallas_src>

<mosaic_0001>
module attributes {stable_mosaic.version = 11 : i64} {
  func.func @_encoder_kernel(%arg0: i32, %arg1: memref<1x8x32xf32, #tpu.memory_space<vmem>>, %arg2: memref<1x1x8xf32, #tpu.memory_space<vmem>>, %arg3: memref<2x32x96xf32, #tpu.memory_space<vmem>>, %arg4: memref<2x1x96xf32, #tpu.memory_space<vmem>>, %arg5: memref<2x32x32xf32, #tpu.memory_space<vmem>>, %arg6: memref<2x1x32xf32, #tpu.memory_space<vmem>>, %arg7: memref<2x32x64xf32, #tpu.memory_space<vmem>>, %arg8: memref<2x1x64xf32, #tpu.memory_space<vmem>>, %arg9: memref<2x64x32xf32, #tpu.memory_space<vmem>>, %arg10: memref<2x1x32xf32, #tpu.memory_space<vmem>>, %arg11: memref<2x1x32xf32, #tpu.memory_space<vmem>>, %arg12: memref<2x1x32xf32, #tpu.memory_space<vmem>>, %arg13: memref<2x1x32xf32, #tpu.memory_space<vmem>>, %arg14: memref<2x1x32xf32, #tpu.memory_space<vmem>>, %arg15: memref<1x1x32xf32, #tpu.memory_space<vmem>>, %arg16: memref<1x1x32xf32, #tpu.memory_space<vmem>>, %arg17: memref<1x8x32xf32, #tpu.memory_space<vmem>>) attributes {dimension_semantics = [#tpu.dimension_semantics<parallel>], iteration_bounds = array<i64: 2>, scalar_prefetch = 0 : i64, scratch_operands = 0 : i64, tpu.core_type = #tpu.core_type<tc>, window_params = [{transform_indices = @transform_0, window_bounds = array<i64: 1, 8, 32>}, {transform_indices = @transform_1, window_bounds = array<i64: 1, 1, 8>}, {pipeline_mode = #tpu.pipeline_mode<synchronous>, transform_indices = @transform_2, window_bounds = array<i64: 2, 32, 96>}, {pipeline_mode = #tpu.pipeline_mode<synchronous>, transform_indices = @transform_3, window_bounds = array<i64: 2, 1, 96>}, {pipeline_mode = #tpu.pipeline_mode<synchronous>, transform_indices = @transform_4, window_bounds = array<i64: 2, 32, 32>}, {pipeline_mode = #tpu.pipeline_mode<synchronous>, transform_indices = @transform_5, window_bounds = array<i64: 2, 1, 32>}, {pipeline_mode = #tpu.pipeline_mode<synchronous>, transform_indices = @transform_6, window_bounds = array<i64: 2, 32, 64>}, {pipeline_mode = #tpu.pipeline_mode<synchronous>, transform_indices = @transform_7, window_bounds = array<i64: 2, 1, 64>}, {pipeline_mode = #tpu.pipeline_mode<synchronous>, transform_indices = @transform_8, window_bounds = array<i64: 2, 64, 32>}, {pipeline_mode = #tpu.pipeline_mode<synchronous>, transform_indices = @transform_9, window_bounds = array<i64: 2, 1, 32>}, {pipeline_mode = #tpu.pipeline_mode<synchronous>, transform_indices = @transform_10, window_bounds = array<i64: 2, 1, 32>}, {pipeline_mode = #tpu.pipeline_mode<synchronous>, transform_indices = @transform_11, window_bounds = array<i64: 2, 1, 32>}, {pipeline_mode = #tpu.pipeline_mode<synchronous>, transform_indices = @transform_12, window_bounds = array<i64: 2, 1, 32>}, {pipeline_mode = #tpu.pipeline_mode<synchronous>, transform_indices = @transform_13, window_bounds = array<i64: 2, 1, 32>}, {pipeline_mode = #tpu.pipeline_mode<synchronous>, transform_indices = @transform_14, window_bounds = array<i64: 1, 1, 32>}, {pipeline_mode = #tpu.pipeline_mode<synchronous>, transform_indices = @transform_15, window_bounds = array<i64: 1, 1, 32>}, {transform_indices = @transform_16, window_bounds = array<i64: 1, 8, 32>}]} {
    %c0 = arith.constant 0 : index
    %c0_0 = arith.constant 0 : index
    %c0_1 = arith.constant 0 : index
    %0 = vector.load %arg1[%c0, %c0_0, %c0_1] : memref<1x8x32xf32, #tpu.memory_space<vmem>>, vector<1x8x32xf32>
    %1 = vector.shape_cast %0 : vector<1x8x32xf32> to vector<8x32xf32>
    %c0_2 = arith.constant 0 : index
    %c0_3 = arith.constant 0 : index
    %c0_4 = arith.constant 0 : index
    %2 = vector.load %arg2[%c0_2, %c0_3, %c0_4] : memref<1x1x8xf32, #tpu.memory_space<vmem>>, vector<1x1x8xf32>
    %3 = vector.shape_cast %2 : vector<1x1x8xf32> to vector<1x8xf32>
    %c0_5 = arith.constant 0 : index
    %c0_6 = arith.constant 0 : index
    %c0_7 = arith.constant 0 : index
    %4 = vector.load %arg11[%c0_5, %c0_6, %c0_7] : memref<2x1x32xf32, #tpu.memory_space<vmem>>, vector<1x1x32xf32>
    %5 = vector.shape_cast %4 : vector<1x1x32xf32> to vector<1x32xf32>
    %c0_8 = arith.constant 0 : index
    %c0_9 = arith.constant 0 : index
    %c0_10 = arith.constant 0 : index
    %6 = vector.load %arg12[%c0_8, %c0_9, %c0_10] : memref<2x1x32xf32, #tpu.memory_space<vmem>>, vector<1x1x32xf32>
    %7 = vector.shape_cast %6 : vector<1x1x32xf32> to vector<1x32xf32>
    %cst = arith.constant dense<0.000000e+00> : vector<8xf32>
    %8 = vector.multi_reduction <add>, %1, %cst [1] : vector<8x32xf32> to vector<8xf32>
    %9 = vector.shape_cast %8 : vector<8xf32> to vector<8x1xf32>
    %cst_11 = arith.constant 3.200000e+01 : f32
    %10 = vector.broadcast %cst_11 : f32 to vector<8x1xf32>
    %11 = arith.divf %9, %10 : vector<8x1xf32>
    %12 = vector.broadcast %11 : vector<8x1xf32> to vector<8x32xf32>
    %13 = arith.subf %1, %12 : vector<8x32xf32>
    %14 = arith.mulf %13, %13 : vector<8x32xf32>
    %cst_12 = arith.constant dense<0.000000e+00> : vector<8xf32>
    %15 = vector.multi_reduction <add>, %14, %cst_12 [1] : vector<8x32xf32> to vector<8xf32>
    %16 = vector.shape_cast %15 : vector<8xf32> to vector<8x1xf32>
    %cst_13 = arith.constant 0.0322580636 : f32
    %17 = vector.broadcast %cst_13 : f32 to vector<8x1xf32>
    %18 = arith.mulf %16, %17 : vector<8x1xf32>
    %19 = math.sqrt %18 : vector<8x1xf32>
    %cst_14 = arith.constant 9.99999997E-7 : f32
    %20 = vector.broadcast %cst_14 : f32 to vector<8x1xf32>
    %21 = arith.addf %19, %20 : vector<8x1xf32>
    %22 = tpu.reciprocal %21 {approx = true} : vector<8x1xf32> -> vector<8x1xf32>
    %23 = vector.broadcast %5 : vector<1x32xf32> to vector<8x32xf32>
    %24 = arith.mulf %23, %13 : vector<8x32xf32>
    %25 = vector.broadcast %22 : vector<8x1xf32> to vector<8x32xf32>
    %26 = arith.mulf %24, %25 : vector<8x32xf32>
    %27 = vector.broadcast %7 : vector<1x32xf32> to vector<8x32xf32>
    %28 = arith.addf %26, %27 : vector<8x32xf32>
    %c0_15 = arith.constant 0 : index
    %c0_16 = arith.constant 0 : index
    %c0_17 = arith.constant 0 : index
    %29 = vector.load %arg3[%c0_15, %c0_16, %c0_17] : memref<2x32x96xf32, #tpu.memory_space<vmem>>, vector<1x32x96xf32>
    %30 = vector.shape_cast %29 : vector<1x32x96xf32> to vector<32x96xf32>
    %cst_18 = arith.constant dense<0.000000e+00> : vector<8x96xf32>
    %31 = tpu.matmul %28, %30, %cst_18 {dimension_numbers = #tpu.dot_dimension_numbers<[1], [0], [0], [1], [0, 0, 1, 1], [], []>} : vector<8x32xf32>, vector<32x96xf32>, vector<8x96xf32> -> vector<8x96xf32>
    %c0_19 = arith.constant 0 : index
    %c0_20 = arith.constant 0 : index
    %c0_21 = arith.constant 0 : index
    %32 = vector.load %arg4[%c0_19, %c0_20, %c0_21] : memref<2x1x96xf32, #tpu.memory_space<vmem>>, vector<1x1x96xf32>
    %33 = vector.shape_cast %32 : vector<1x1x96xf32> to vector<1x96xf32>
    %34 = vector.broadcast %33 : vector<1x96xf32> to vector<8x96xf32>
    %35 = arith.addf %31, %34 : vector<8x96xf32>
    %cst_22 = arith.constant 0.000000e+00 : f32
    %36 = vector.broadcast %cst_22 : f32 to vector<8x32xf32>
    %37 = vector.extract_strided_slice %35 {offsets = [0, 0], sizes = [8, 8], strides = [1, 1]} : vector<8x96xf32> to vector<8x8xf32>
    %38 = vector.extract_strided_slice %35 {offsets = [0, 32], sizes = [8, 8], strides = [1, 1]} : vector<8x96xf32> to vector<8x8xf32>
    %39 = vector.extract_strided_slice %35 {offsets = [0, 64], sizes = [8, 8], strides = [1, 1]} : vector<8x96xf32> to vector<8x8xf32>
    %cst_23 = arith.constant dense<0.000000e+00> : vector<8x8xf32>
    %40 = tpu.matmul %37, %38, %cst_23 {dimension_numbers = #tpu.dot_dimension_numbers<[1], [1], [0], [0], [0, 0, 1, 0], [], []>} : vector<8x8xf32>, vector<8x8xf32>, vector<8x8xf32> -> vector<8x8xf32>
    %cst_24 = arith.constant 0.353553385 : f32
    %41 = vector.broadcast %cst_24 : f32 to vector<8x8xf32>
    %42 = arith.mulf %40, %41 : vector<8x8xf32>
    %cst_25 = arith.constant 0.000000e+00 : f32
    %43 = vector.broadcast %cst_25 : f32 to vector<1x8xf32>
    %44 = arith.cmpf oeq, %3, %43 : vector<1x8xf32>
    %cst_26 = arith.constant -1.000000e+09 : f32
    %45 = vector.shape_cast %44 : vector<1x8xi1> to vector<1x8xi1>
    %46 = vector.broadcast %45 : vector<1x8xi1> to vector<8x8xi1>
    %47 = vector.broadcast %cst_26 : f32 to vector<8x8xf32>
    %48 = arith.select %46, %47, %42 : vector<8x8xi1>, vector<8x8xf32>
    %cst_27 = arith.constant dense<0xFF800000> : vector<8xf32>
    %49 = vector.multi_reduction <maximumf>, %48, %cst_27 [1] : vector<8x8xf32> to vector<8xf32>
    %50 = vector.shape_cast %49 : vector<8xf32> to vector<8x1xf32>
    %51 = vector.broadcast %50 : vector<8x1xf32> to vector<8x8xf32>
    %52 = arith.subf %48, %51 : vector<8x8xf32>
    %53 = math.exp %52 : vector<8x8xf32>
    %cst_28 = arith.constant dense<0.000000e+00> : vector<8xf32>
    %54 = vector.multi_reduction <add>, %53, %cst_28 [1] : vector<8x8xf32> to vector<8xf32>
    %55 = vector.shape_cast %54 : vector<8xf32> to vector<8x1xf32>
    %56 = tpu.reciprocal %55 {approx = true} : vector<8x1xf32> -> vector<8x1xf32>
    %57 = vector.broadcast %56 : vector<8x1xf32> to vector<8x8xf32>
    %58 = arith.mulf %53, %57 : vector<8x8xf32>
    %cst_29 = arith.constant dense<0.000000e+00> : vector<8x8xf32>
    %59 = tpu.matmul %58, %39, %cst_29 {dimension_numbers = #tpu.dot_dimension_numbers<[1], [0], [0], [1], [0, 0, 1, 1], [], []>} : vector<8x8xf32>, vector<8x8xf32>, vector<8x8xf32> -> vector<8x8xf32>
    %c0_30 = arith.constant 0 : index
    %c0_31 = arith.constant 0 : index
    %c0_32 = arith.constant 0 : index
    %60 = vector.load %arg5[%c0_30, %c0_31, %c0_32] : memref<2x32x32xf32, #tpu.memory_space<vmem>>, vector<1x8x32xf32>
    %61 = vector.shape_cast %60 : vector<1x8x32xf32> to vector<8x32xf32>
    %cst_33 = arith.constant dense<0.000000e+00> : vector<8x32xf32>
    %62 = tpu.matmul %59, %61, %cst_33 {dimension_numbers = #tpu.dot_dimension_numbers<[1], [0], [0], [1], [0, 0, 1, 1], [], []>} : vector<8x8xf32>, vector<8x32xf32>, vector<8x32xf32> -> vector<8x32xf32>
    %63 = arith.addf %36, %62 : vector<8x32xf32>
    %64 = vector.extract_strided_slice %35 {offsets = [0, 8], sizes = [8, 8], strides = [1, 1]} : vector<8x96xf32> to vector<8x8xf32>
    %65 = vector.extract_strided_slice %35 {offsets = [0, 40], sizes = [8, 8], strides = [1, 1]} : vector<8x96xf32> to vector<8x8xf32>
    %66 = vector.extract_strided_slice %35 {offsets = [0, 72], sizes = [8, 8], strides = [1, 1]} : vector<8x96xf32> to vector<8x8xf32>
    %cst_34 = arith.constant dense<0.000000e+00> : vector<8x8xf32>
    %67 = tpu.matmul %64, %65, %cst_34 {dimension_numbers = #tpu.dot_dimension_numbers<[1], [1], [0], [0], [0, 0, 1, 0], [], []>} : vector<8x8xf32>, vector<8x8xf32>, vector<8x8xf32> -> vector<8x8xf32>
    %cst_35 = arith.constant 0.353553385 : f32
    %68 = vector.broadcast %cst_35 : f32 to vector<8x8xf32>
    %69 = arith.mulf %67, %68 : vector<8x8xf32>
    %cst_36 = arith.constant 0.000000e+00 : f32
    %70 = vector.broadcast %cst_36 : f32 to vector<1x8xf32>
    %71 = arith.cmpf oeq, %3, %70 : vector<1x8xf32>
    %cst_37 = arith.constant -1.000000e+09 : f32
    %72 = vector.shape_cast %71 : vector<1x8xi1> to vector<1x8xi1>
    %73 = vector.broadcast %72 : vector<1x8xi1> to vector<8x8xi1>
    %74 = vector.broadcast %cst_37 : f32 to vector<8x8xf32>
    %75 = arith.select %73, %74, %69 : vector<8x8xi1>, vector<8x8xf32>
    %cst_38 = arith.constant dense<0xFF800000> : vector<8xf32>
    %76 = vector.multi_reduction <maximumf>, %75, %cst_38 [1] : vector<8x8xf32> to vector<8xf32>
    %77 = vector.shape_cast %76 : vector<8xf32> to vector<8x1xf32>
    %78 = vector.broadcast %77 : vector<8x1xf32> to vector<8x8xf32>
    %79 = arith.subf %75, %78 : vector<8x8xf32>
    %80 = math.exp %79 : vector<8x8xf32>
    %cst_39 = arith.constant dense<0.000000e+00> : vector<8xf32>
    %81 = vector.multi_reduction <add>, %80, %cst_39 [1] : vector<8x8xf32> to vector<8xf32>
    %82 = vector.shape_cast %81 : vector<8xf32> to vector<8x1xf32>
    %83 = tpu.reciprocal %82 {approx = true} : vector<8x1xf32> -> vector<8x1xf32>
    %84 = vector.broadcast %83 : vector<8x1xf32> to vector<8x8xf32>
    %85 = arith.mulf %80, %84 : vector<8x8xf32>
    %cst_40 = arith.constant dense<0.000000e+00> : vector<8x8xf32>
    %86 = tpu.matmul %85, %66, %cst_40 {dimension_numbers = #tpu.dot_dimension_numbers<[1], [0], [0], [1], [0, 0, 1, 1], [], []>} : vector<8x8xf32>, vector<8x8xf32>, vector<8x8xf32> -> vector<8x8xf32>
    %c0_41 = arith.constant 0 : index
    %c8 = arith.constant 8 : index
    %c0_42 = arith.constant 0 : index
    %87 = vector.load %arg5[%c0_41, %c8, %c0_42] : memref<2x32x32xf32, #tpu.memory_space<vmem>>, vector<1x8x32xf32>
    %88 = vector.shape_cast %87 : vector<1x8x32xf32> to vector<8x32xf32>
    %cst_43 = arith.constant dense<0.000000e+00> : vector<8x32xf32>
    %89 = tpu.matmul %86, %88, %cst_43 {dimension_numbers = #tpu.dot_dimension_numbers<[1], [0], [0], [1], [0, 0, 1, 1], [], []>} : vector<8x8xf32>, vector<8x32xf32>, vector<8x32xf32> -> vector<8x32xf32>
    %90 = arith.addf %63, %89 : vector<8x32xf32>
    %91 = vector.extract_strided_slice %35 {offsets = [0, 16], sizes = [8, 8], strides = [1, 1]} : vector<8x96xf32> to vector<8x8xf32>
    %92 = vector.extract_strided_slice %35 {offsets = [0, 48], sizes = [8, 8], strides = [1, 1]} : vector<8x96xf32> to vector<8x8xf32>
    %93 = vector.extract_strided_slice %35 {offsets = [0, 80], sizes = [8, 8], strides = [1, 1]} : vector<8x96xf32> to vector<8x8xf32>
    %cst_44 = arith.constant dense<0.000000e+00> : vector<8x8xf32>
    %94 = tpu.matmul %91, %92, %cst_44 {dimension_numbers = #tpu.dot_dimension_numbers<[1], [1], [0], [0], [0, 0, 1, 0], [], []>} : vector<8x8xf32>, vector<8x8xf32>, vector<8x8xf32> -> vector<8x8xf32>
    %cst_45 = arith.constant 0.353553385 : f32
    %95 = vector.broadcast %cst_45 : f32 to vector<8x8xf32>
    %96 = arith.mulf %94, %95 : vector<8x8xf32>
    %cst_46 = arith.constant 0.000000e+00 : f32
    %97 = vector.broadcast %cst_46 : f32 to vector<1x8xf32>
    %98 = arith.cmpf oeq, %3, %97 : vector<1x8xf32>
    %cst_47 = arith.constant -1.000000e+09 : f32
    %99 = vector.shape_cast %98 : vector<1x8xi1> to vector<1x8xi1>
    %100 = vector.broadcast %99 : vector<1x8xi1> to vector<8x8xi1>
    %101 = vector.broadcast %cst_47 : f32 to vector<8x8xf32>
    %102 = arith.select %100, %101, %96 : vector<8x8xi1>, vector<8x8xf32>
    %cst_48 = arith.constant dense<0xFF800000> : vector<8xf32>
    %103 = vector.multi_reduction <maximumf>, %102, %cst_48 [1] : vector<8x8xf32> to vector<8xf32>
    %104 = vector.shape_cast %103 : vector<8xf32> to vector<8x1xf32>
    %105 = vector.broadcast %104 : vector<8x1xf32> to vector<8x8xf32>
    %106 = arith.subf %102, %105 : vector<8x8xf32>
    %107 = math.exp %106 : vector<8x8xf32>
    %cst_49 = arith.constant dense<0.000000e+00> : vector<8xf32>
    %108 = vector.multi_reduction <add>, %107, %cst_49 [1] : vector<8x8xf32> to vector<8xf32>
    %109 = vector.shape_cast %108 : vector<8xf32> to vector<8x1xf32>
    %110 = tpu.reciprocal %109 {approx = true} : vector<8x1xf32> -> vector<8x1xf32>
    %111 = vector.broadcast %110 : vector<8x1xf32> to vector<8x8xf32>
    %112 = arith.mulf %107, %111 : vector<8x8xf32>
    %cst_50 = arith.constant dense<0.000000e+00> : vector<8x8xf32>
    %113 = tpu.matmul %112, %93, %cst_50 {dimension_numbers = #tpu.dot_dimension_numbers<[1], [0], [0], [1], [0, 0, 1, 1], [], []>} : vector<8x8xf32>, vector<8x8xf32>, vector<8x8xf32> -> vector<8x8xf32>
    %c0_51 = arith.constant 0 : index
    %c16 = arith.constant 16 : index
    %c0_52 = arith.constant 0 : index
    %114 = vector.load %arg5[%c0_51, %c16, %c0_52] : memref<2x32x32xf32, #tpu.memory_space<vmem>>, vector<1x8x32xf32>
    %115 = vector.shape_cast %114 : vector<1x8x32xf32> to vector<8x32xf32>
    %cst_53 = arith.constant dense<0.000000e+00> : vector<8x32xf32>
    %116 = tpu.matmul %113, %115, %cst_53 {dimension_numbers = #tpu.dot_dimension_numbers<[1], [0], [0], [1], [0, 0, 1, 1], [], []>} : vector<8x8xf32>, vector<8x32xf32>, vector<8x32xf32> -> vector<8x32xf32>
    %117 = arith.addf %90, %116 : vector<8x32xf32>
    %118 = vector.extract_strided_slice %35 {offsets = [0, 24], sizes = [8, 8], strides = [1, 1]} : vector<8x96xf32> to vector<8x8xf32>
    %119 = vector.extract_strided_slice %35 {offsets = [0, 56], sizes = [8, 8], strides = [1, 1]} : vector<8x96xf32> to vector<8x8xf32>
    %120 = vector.extract_strided_slice %35 {offsets = [0, 88], sizes = [8, 8], strides = [1, 1]} : vector<8x96xf32> to vector<8x8xf32>
    %cst_54 = arith.constant dense<0.000000e+00> : vector<8x8xf32>
    %121 = tpu.matmul %118, %119, %cst_54 {dimension_numbers = #tpu.dot_dimension_numbers<[1], [1], [0], [0], [0, 0, 1, 0], [], []>} : vector<8x8xf32>, vector<8x8xf32>, vector<8x8xf32> -> vector<8x8xf32>
    %cst_55 = arith.constant 0.353553385 : f32
    %122 = vector.broadcast %cst_55 : f32 to vector<8x8xf32>
    %123 = arith.mulf %121, %122 : vector<8x8xf32>
    %cst_56 = arith.constant 0.000000e+00 : f32
    %124 = vector.broadcast %cst_56 : f32 to vector<1x8xf32>
    %125 = arith.cmpf oeq, %3, %124 : vector<1x8xf32>
    %cst_57 = arith.constant -1.000000e+09 : f32
    %126 = vector.shape_cast %125 : vector<1x8xi1> to vector<1x8xi1>
    %127 = vector.broadcast %126 : vector<1x8xi1> to vector<8x8xi1>
    %128 = vector.broadcast %cst_57 : f32 to vector<8x8xf32>
    %129 = arith.select %127, %128, %123 : vector<8x8xi1>, vector<8x8xf32>
    %cst_58 = arith.constant dense<0xFF800000> : vector<8xf32>
    %130 = vector.multi_reduction <maximumf>, %129, %cst_58 [1] : vector<8x8xf32> to vector<8xf32>
    %131 = vector.shape_cast %130 : vector<8xf32> to vector<8x1xf32>
    %132 = vector.broadcast %131 : vector<8x1xf32> to vector<8x8xf32>
    %133 = arith.subf %129, %132 : vector<8x8xf32>
    %134 = math.exp %133 : vector<8x8xf32>
    %cst_59 = arith.constant dense<0.000000e+00> : vector<8xf32>
    %135 = vector.multi_reduction <add>, %134, %cst_59 [1] : vector<8x8xf32> to vector<8xf32>
    %136 = vector.shape_cast %135 : vector<8xf32> to vector<8x1xf32>
    %137 = tpu.reciprocal %136 {approx = true} : vector<8x1xf32> -> vector<8x1xf32>
    %138 = vector.broadcast %137 : vector<8x1xf32> to vector<8x8xf32>
    %139 = arith.mulf %134, %138 : vector<8x8xf32>
    %cst_60 = arith.constant dense<0.000000e+00> : vector<8x8xf32>
    %140 = tpu.matmul %139, %120, %cst_60 {dimension_numbers = #tpu.dot_dimension_numbers<[1], [0], [0], [1], [0, 0, 1, 1], [], []>} : vector<8x8xf32>, vector<8x8xf32>, vector<8x8xf32> -> vector<8x8xf32>
    %c0_61 = arith.constant 0 : index
    %c24 = arith.constant 24 : index
    %c0_62 = arith.constant 0 : index
    %141 = vector.load %arg5[%c0_61, %c24, %c0_62] : memref<2x32x32xf32, #tpu.memory_space<vmem>>, vector<1x8x32xf32>
    %142 = vector.shape_cast %141 : vector<1x8x32xf32> to vector<8x32xf32>
    %cst_63 = arith.constant dense<0.000000e+00> : vector<8x32xf32>
    %143 = tpu.matmul %140, %142, %cst_63 {dimension_numbers = #tpu.dot_dimension_numbers<[1], [0], [0], [1], [0, 0, 1, 1], [], []>} : vector<8x8xf32>, vector<8x32xf32>, vector<8x32xf32> -> vector<8x32xf32>
    %144 = arith.addf %117, %143 : vector<8x32xf32>
    %145 = arith.addf %1, %144 : vector<8x32xf32>
    %c0_64 = arith.constant 0 : index
    %c0_65 = arith.constant 0 : index
    %c0_66 = arith.constant 0 : index
    %146 = vector.load %arg6[%c0_64, %c0_65, %c0_66] : memref<2x1x32xf32, #tpu.memory_space<vmem>>, vector<1x1x32xf32>
    %147 = vector.shape_cast %146 : vector<1x1x32xf32> to vector<1x32xf32>
    %148 = vector.broadcast %147 : vector<1x32xf32> to vector<8x32xf32>
    %149 = arith.addf %145, %148 : vector<8x32xf32>
    %c0_67 = arith.constant 0 : index
    %c0_68 = arith.constant 0 : index
    %c0_69 = arith.constant 0 : index
    %150 = vector.load %arg13[%c0_67, %c0_68, %c0_69] : memref<2x1x32xf32, #tpu.memory_space<vmem>>, vector<1x1x32xf32>
    %151 = vector.shape_cast %150 : vector<1x1x32xf32> to vector<1x32xf32>
    %c0_70 = arith.constant 0 : index
    %c0_71 = arith.constant 0 : index
    %c0_72 = arith.constant 0 : index
    %152 = vector.load %arg14[%c0_70, %c0_71, %c0_72] : memref<2x1x32xf32, #tpu.memory_space<vmem>>, vector<1x1x32xf32>
    %153 = vector.shape_cast %152 : vector<1x1x32xf32> to vector<1x32xf32>
    %cst_73 = arith.constant dense<0.000000e+00> : vector<8xf32>
    %154 = vector.multi_reduction <add>, %149, %cst_73 [1] : vector<8x32xf32> to vector<8xf32>
    %155 = vector.shape_cast %154 : vector<8xf32> to vector<8x1xf32>
    %cst_74 = arith.constant 3.200000e+01 : f32
    %156 = vector.broadcast %cst_74 : f32 to vector<8x1xf32>
    %157 = arith.divf %155, %156 : vector<8x1xf32>
    %158 = vector.broadcast %157 : vector<8x1xf32> to vector<8x32xf32>
    %159 = arith.subf %149, %158 : vector<8x32xf32>
    %160 = arith.mulf %159, %159 : vector<8x32xf32>
    %cst_75 = arith.constant dense<0.000000e+00> : vector<8xf32>
    %161 = vector.multi_reduction <add>, %160, %cst_75 [1] : vector<8x32xf32> to vector<8xf32>
    %162 = vector.shape_cast %161 : vector<8xf32> to vector<8x1xf32>
    %cst_76 = arith.constant 0.0322580636 : f32
    %163 = vector.broadcast %cst_76 : f32 to vector<8x1xf32>
    %164 = arith.mulf %162, %163 : vector<8x1xf32>
    %165 = math.sqrt %164 : vector<8x1xf32>
    %cst_77 = arith.constant 9.99999997E-7 : f32
    %166 = vector.broadcast %cst_77 : f32 to vector<8x1xf32>
    %167 = arith.addf %165, %166 : vector<8x1xf32>
    %168 = tpu.reciprocal %167 {approx = true} : vector<8x1xf32> -> vector<8x1xf32>
    %169 = vector.broadcast %151 : vector<1x32xf32> to vector<8x32xf32>
    %170 = arith.mulf %169, %159 : vector<8x32xf32>
    %171 = vector.broadcast %168 : vector<8x1xf32> to vector<8x32xf32>
    %172 = arith.mulf %170, %171 : vector<8x32xf32>
    %173 = vector.broadcast %153 : vector<1x32xf32> to vector<8x32xf32>
    %174 = arith.addf %172, %173 : vector<8x32xf32>
    %c0_78 = arith.constant 0 : index
    %c0_79 = arith.constant 0 : index
    %c0_80 = arith.constant 0 : index
    %175 = vector.load %arg7[%c0_78, %c0_79, %c0_80] : memref<2x32x64xf32, #tpu.memory_space<vmem>>, vector<1x32x64xf32>
    %176 = vector.shape_cast %175 : vector<1x32x64xf32> to vector<32x64xf32>
    %cst_81 = arith.constant dense<0.000000e+00> : vector<8x64xf32>
    %177 = tpu.matmul %174, %176, %cst_81 {dimension_numbers = #tpu.dot_dimension_numbers<[1], [0], [0], [1], [0, 0, 1, 1], [], []>} : vector<8x32xf32>, vector<32x64xf32>, vector<8x64xf32> -> vector<8x64xf32>
    %c0_82 = arith.constant 0 : index
    %c0_83 = arith.constant 0 : index
    %c0_84 = arith.constant 0 : index
    %178 = vector.load %arg8[%c0_82, %c0_83, %c0_84] : memref<2x1x64xf32, #tpu.memory_space<vmem>>, vector<1x1x64xf32>
    %179 = vector.shape_cast %178 : vector<1x1x64xf32> to vector<1x64xf32>
    %180 = vector.broadcast %179 : vector<1x64xf32> to vector<8x64xf32>
    %181 = arith.addf %177, %180 : vector<8x64xf32>
    %cst_85 = arith.constant 0.000000e+00 : f32
    %182 = vector.broadcast %cst_85 : f32 to vector<8x64xf32>
    %183 = arith.maximumf %181, %182 : vector<8x64xf32>
    %c0_86 = arith.constant 0 : index
    %c0_87 = arith.constant 0 : index
    %c0_88 = arith.constant 0 : index
    %184 = vector.load %arg9[%c0_86, %c0_87, %c0_88] : memref<2x64x32xf32, #tpu.memory_space<vmem>>, vector<1x64x32xf32>
    %185 = vector.shape_cast %184 : vector<1x64x32xf32> to vector<64x32xf32>
    %cst_89 = arith.constant dense<0.000000e+00> : vector<8x32xf32>
    %186 = tpu.matmul %183, %185, %cst_89 {dimension_numbers = #tpu.dot_dimension_numbers<[1], [0], [0], [1], [0, 0, 1, 1], [], []>} : vector<8x64xf32>, vector<64x32xf32>, vector<8x32xf32> -> vector<8x32xf32>
    %c0_90 = arith.constant 0 : index
    %c0_91 = arith.constant 0 : index
    %c0_92 = arith.constant 0 : index
    %187 = vector.load %arg10[%c0_90, %c0_91, %c0_92] : memref<2x1x32xf32, #tpu.memory_space<vmem>>, vector<1x1x32xf32>
    %188 = vector.shape_cast %187 : vector<1x1x32xf32> to vector<1x32xf32>
    %189 = vector.broadcast %188 : vector<1x32xf32> to vector<8x32xf32>
    %190 = arith.addf %186, %189 : vector<8x32xf32>
    %191 = arith.addf %149, %190 : vector<8x32xf32>
    %c1 = arith.constant 1 : index
    %c0_93 = arith.constant 0 : index
    %c0_94 = arith.constant 0 : index
    %192 = vector.load %arg11[%c1, %c0_93, %c0_94] : memref<2x1x32xf32, #tpu.memory_space<vmem>>, vector<1x1x32xf32>
    %193 = vector.shape_cast %192 : vector<1x1x32xf32> to vector<1x32xf32>
    %c1_95 = arith.constant 1 : index
    %c0_96 = arith.constant 0 : index
    %c0_97 = arith.constant 0 : index
    %194 = vector.load %arg12[%c1_95, %c0_96, %c0_97] : memref<2x1x32xf32, #tpu.memory_space<vmem>>, vector<1x1x32xf32>
    %195 = vector.shape_cast %194 : vector<1x1x32xf32> to vector<1x32xf32>
    %cst_98 = arith.constant dense<0.000000e+00> : vector<8xf32>
    %196 = vector.multi_reduction <add>, %191, %cst_98 [1] : vector<8x32xf32> to vector<8xf32>
    %197 = vector.shape_cast %196 : vector<8xf32> to vector<8x1xf32>
    %cst_99 = arith.constant 3.200000e+01 : f32
    %198 = vector.broadcast %cst_99 : f32 to vector<8x1xf32>
    %199 = arith.divf %197, %198 : vector<8x1xf32>
    %200 = vector.broadcast %199 : vector<8x1xf32> to vector<8x32xf32>
    %201 = arith.subf %191, %200 : vector<8x32xf32>
    %202 = arith.mulf %201, %201 : vector<8x32xf32>
    %cst_100 = arith.constant dense<0.000000e+00> : vector<8xf32>
    %203 = vector.multi_reduction <add>, %202, %cst_100 [1] : vector<8x32xf32> to vector<8xf32>
    %204 = vector.shape_cast %203 : vector<8xf32> to vector<8x1xf32>
    %cst_101 = arith.constant 0.0322580636 : f32
    %205 = vector.broadcast %cst_101 : f32 to vector<8x1xf32>
    %206 = arith.mulf %204, %205 : vector<8x1xf32>
    %207 = math.sqrt %206 : vector<8x1xf32>
    %cst_102 = arith.constant 9.99999997E-7 : f32
    %208 = vector.broadcast %cst_102 : f32 to vector<8x1xf32>
    %209 = arith.addf %207, %208 : vector<8x1xf32>
    %210 = tpu.reciprocal %209 {approx = true} : vector<8x1xf32> -> vector<8x1xf32>
    %211 = vector.broadcast %193 : vector<1x32xf32> to vector<8x32xf32>
    %212 = arith.mulf %211, %201 : vector<8x32xf32>
    %213 = vector.broadcast %210 : vector<8x1xf32> to vector<8x32xf32>
    %214 = arith.mulf %212, %213 : vector<8x32xf32>
    %215 = vector.broadcast %195 : vector<1x32xf32> to vector<8x32xf32>
    %216 = arith.addf %214, %215 : vector<8x32xf32>
    %c1_103 = arith.constant 1 : index
    %c0_104 = arith.constant 0 : index
    %c0_105 = arith.constant 0 : index
    %217 = vector.load %arg3[%c1_103, %c0_104, %c0_105] : memref<2x32x96xf32, #tpu.memory_space<vmem>>, vector<1x32x96xf32>
    %218 = vector.shape_cast %217 : vector<1x32x96xf32> to vector<32x96xf32>
    %cst_106 = arith.constant dense<0.000000e+00> : vector<8x96xf32>
    %219 = tpu.matmul %216, %218, %cst_106 {dimension_numbers = #tpu.dot_dimension_numbers<[1], [0], [0], [1], [0, 0, 1, 1], [], []>} : vector<8x32xf32>, vector<32x96xf32>, vector<8x96xf32> -> vector<8x96xf32>
    %c1_107 = arith.constant 1 : index
    %c0_108 = arith.constant 0 : index
    %c0_109 = arith.constant 0 : index
    %220 = vector.load %arg4[%c1_107, %c0_108, %c0_109] : memref<2x1x96xf32, #tpu.memory_space<vmem>>, vector<1x1x96xf32>
    %221 = vector.shape_cast %220 : vector<1x1x96xf32> to vector<1x96xf32>
    %222 = vector.broadcast %221 : vector<1x96xf32> to vector<8x96xf32>
    %223 = arith.addf %219, %222 : vector<8x96xf32>
    %cst_110 = arith.constant 0.000000e+00 : f32
    %224 = vector.broadcast %cst_110 : f32 to vector<8x32xf32>
    %225 = vector.extract_strided_slice %223 {offsets = [0, 0], sizes = [8, 8], strides = [1, 1]} : vector<8x96xf32> to vector<8x8xf32>
    %226 = vector.extract_strided_slice %223 {offsets = [0, 32], sizes = [8, 8], strides = [1, 1]} : vector<8x96xf32> to vector<8x8xf32>
    %227 = vector.extract_strided_slice %223 {offsets = [0, 64], sizes = [8, 8], strides = [1, 1]} : vector<8x96xf32> to vector<8x8xf32>
    %cst_111 = arith.constant dense<0.000000e+00> : vector<8x8xf32>
    %228 = tpu.matmul %225, %226, %cst_111 {dimension_numbers = #tpu.dot_dimension_numbers<[1], [1], [0], [0], [0, 0, 1, 0], [], []>} : vector<8x8xf32>, vector<8x8xf32>, vector<8x8xf32> -> vector<8x8xf32>
    %cst_112 = arith.constant 0.353553385 : f32
    %229 = vector.broadcast %cst_112 : f32 to vector<8x8xf32>
    %230 = arith.mulf %228, %229 : vector<8x8xf32>
    %cst_113 = arith.constant 0.000000e+00 : f32
    %231 = vector.broadcast %cst_113 : f32 to vector<1x8xf32>
    %232 = arith.cmpf oeq, %3, %231 : vector<1x8xf32>
    %cst_114 = arith.constant -1.000000e+09 : f32
    %233 = vector.shape_cast %232 : vector<1x8xi1> to vector<1x8xi1>
    %234 = vector.broadcast %233 : vector<1x8xi1> to vector<8x8xi1>
    %235 = vector.broadcast %cst_114 : f32 to vector<8x8xf32>
    %236 = arith.select %234, %235, %230 : vector<8x8xi1>, vector<8x8xf32>
    %cst_115 = arith.constant dense<0xFF800000> : vector<8xf32>
    %237 = vector.multi_reduction <maximumf>, %236, %cst_115 [1] : vector<8x8xf32> to vector<8xf32>
    %238 = vector.shape_cast %237 : vector<8xf32> to vector<8x1xf32>
    %239 = vector.broadcast %238 : vector<8x1xf32> to vector<8x8xf32>
    %240 = arith.subf %236, %239 : vector<8x8xf32>
    %241 = math.exp %240 : vector<8x8xf32>
    %cst_116 = arith.constant dense<0.000000e+00> : vector<8xf32>
    %242 = vector.multi_reduction <add>, %241, %cst_116 [1] : vector<8x8xf32> to vector<8xf32>
    %243 = vector.shape_cast %242 : vector<8xf32> to vector<8x1xf32>
    %244 = tpu.reciprocal %243 {approx = true} : vector<8x1xf32> -> vector<8x1xf32>
    %245 = vector.broadcast %244 : vector<8x1xf32> to vector<8x8xf32>
    %246 = arith.mulf %241, %245 : vector<8x8xf32>
    %cst_117 = arith.constant dense<0.000000e+00> : vector<8x8xf32>
    %247 = tpu.matmul %246, %227, %cst_117 {dimension_numbers = #tpu.dot_dimension_numbers<[1], [0], [0], [1], [0, 0, 1, 1], [], []>} : vector<8x8xf32>, vector<8x8xf32>, vector<8x8xf32> -> vector<8x8xf32>
    %c1_118 = arith.constant 1 : index
    %c0_119 = arith.constant 0 : index
    %c0_120 = arith.constant 0 : index
    %248 = vector.load %arg5[%c1_118, %c0_119, %c0_120] : memref<2x32x32xf32, #tpu.memory_space<vmem>>, vector<1x8x32xf32>
    %249 = vector.shape_cast %248 : vector<1x8x32xf32> to vector<8x32xf32>
    %cst_121 = arith.constant dense<0.000000e+00> : vector<8x32xf32>
    %250 = tpu.matmul %247, %249, %cst_121 {dimension_numbers = #tpu.dot_dimension_numbers<[1], [0], [0], [1], [0, 0, 1, 1], [], []>} : vector<8x8xf32>, vector<8x32xf32>, vector<8x32xf32> -> vector<8x32xf32>
    %251 = arith.addf %224, %250 : vector<8x32xf32>
    %252 = vector.extract_strided_slice %223 {offsets = [0, 8], sizes = [8, 8], strides = [1, 1]} : vector<8x96xf32> to vector<8x8xf32>
    %253 = vector.extract_strided_slice %223 {offsets = [0, 40], sizes = [8, 8], strides = [1, 1]} : vector<8x96xf32> to vector<8x8xf32>
    %254 = vector.extract_strided_slice %223 {offsets = [0, 72], sizes = [8, 8], strides = [1, 1]} : vector<8x96xf32> to vector<8x8xf32>
    %cst_122 = arith.constant dense<0.000000e+00> : vector<8x8xf32>
    %255 = tpu.matmul %252, %253, %cst_122 {dimension_numbers = #tpu.dot_dimension_numbers<[1], [1], [0], [0], [0, 0, 1, 0], [], []>} : vector<8x8xf32>, vector<8x8xf32>, vector<8x8xf32> -> vector<8x8xf32>
    %cst_123 = arith.constant 0.353553385 : f32
    %256 = vector.broadcast %cst_123 : f32 to vector<8x8xf32>
    %257 = arith.mulf %255, %256 : vector<8x8xf32>
    %cst_124 = arith.constant 0.000000e+00 : f32
    %258 = vector.broadcast %cst_124 : f32 to vector<1x8xf32>
    %259 = arith.cmpf oeq, %3, %258 : vector<1x8xf32>
    %cst_125 = arith.constant -1.000000e+09 : f32
    %260 = vector.shape_cast %259 : vector<1x8xi1> to vector<1x8xi1>
    %261 = vector.broadcast %260 : vector<1x8xi1> to vector<8x8xi1>
    %262 = vector.broadcast %cst_125 : f32 to vector<8x8xf32>
    %263 = arith.select %261, %262, %257 : vector<8x8xi1>, vector<8x8xf32>
    %cst_126 = arith.constant dense<0xFF800000> : vector<8xf32>
    %264 = vector.multi_reduction <maximumf>, %263, %cst_126 [1] : vector<8x8xf32> to vector<8xf32>
    %265 = vector.shape_cast %264 : vector<8xf32> to vector<8x1xf32>
    %266 = vector.broadcast %265 : vector<8x1xf32> to vector<8x8xf32>
    %267 = arith.subf %263, %266 : vector<8x8xf32>
    %268 = math.exp %267 : vector<8x8xf32>
    %cst_127 = arith.constant dense<0.000000e+00> : vector<8xf32>
    %269 = vector.multi_reduction <add>, %268, %cst_127 [1] : vector<8x8xf32> to vector<8xf32>
    %270 = vector.shape_cast %269 : vector<8xf32> to vector<8x1xf32>
    %271 = tpu.reciprocal %270 {approx = true} : vector<8x1xf32> -> vector<8x1xf32>
    %272 = vector.broadcast %271 : vector<8x1xf32> to vector<8x8xf32>
    %273 = arith.mulf %268, %272 : vector<8x8xf32>
    %cst_128 = arith.constant dense<0.000000e+00> : vector<8x8xf32>
    %274 = tpu.matmul %273, %254, %cst_128 {dimension_numbers = #tpu.dot_dimension_numbers<[1], [0], [0], [1], [0, 0, 1, 1], [], []>} : vector<8x8xf32>, vector<8x8xf32>, vector<8x8xf32> -> vector<8x8xf32>
    %c1_129 = arith.constant 1 : index
    %c8_130 = arith.constant 8 : index
    %c0_131 = arith.constant 0 : index
    %275 = vector.load %arg5[%c1_129, %c8_130, %c0_131] : memref<2x32x32xf32, #tpu.memory_space<vmem>>, vector<1x8x32xf32>
    %276 = vector.shape_cast %275 : vector<1x8x32xf32> to vector<8x32xf32>
    %cst_132 = arith.constant dense<0.000000e+00> : vector<8x32xf32>
    %277 = tpu.matmul %274, %276, %cst_132 {dimension_numbers = #tpu.dot_dimension_numbers<[1], [0], [0], [1], [0, 0, 1, 1], [], []>} : vector<8x8xf32>, vector<8x32xf32>, vector<8x32xf32> -> vector<8x32xf32>
    %278 = arith.addf %251, %277 : vector<8x32xf32>
    %279 = vector.extract_strided_slice %223 {offsets = [0, 16], sizes = [8, 8], strides = [1, 1]} : vector<8x96xf32> to vector<8x8xf32>
    %280 = vector.extract_strided_slice %223 {offsets = [0, 48], sizes = [8, 8], strides = [1, 1]} : vector<8x96xf32> to vector<8x8xf32>
    %281 = vector.extract_strided_slice %223 {offsets = [0, 80], sizes = [8, 8], strides = [1, 1]} : vector<8x96xf32> to vector<8x8xf32>
    %cst_133 = arith.constant dense<0.000000e+00> : vector<8x8xf32>
    %282 = tpu.matmul %279, %280, %cst_133 {dimension_numbers = #tpu.dot_dimension_numbers<[1], [1], [0], [0], [0, 0, 1, 0], [], []>} : vector<8x8xf32>, vector<8x8xf32>, vector<8x8xf32> -> vector<8x8xf32>
    %cst_134 = arith.constant 0.353553385 : f32
    %283 = vector.broadcast %cst_134 : f32 to vector<8x8xf32>
    %284 = arith.mulf %282, %283 : vector<8x8xf32>
    %cst_135 = arith.constant 0.000000e+00 : f32
    %285 = vector.broadcast %cst_135 : f32 to vector<1x8xf32>
    %286 = arith.cmpf oeq, %3, %285 : vector<1x8xf32>
    %cst_136 = arith.constant -1.000000e+09 : f32
    %287 = vector.shape_cast %286 : vector<1x8xi1> to vector<1x8xi1>
    %288 = vector.broadcast %287 : vector<1x8xi1> to vector<8x8xi1>
    %289 = vector.broadcast %cst_136 : f32 to vector<8x8xf32>
    %290 = arith.select %288, %289, %284 : vector<8x8xi1>, vector<8x8xf32>
    %cst_137 = arith.constant dense<0xFF800000> : vector<8xf32>
    %291 = vector.multi_reduction <maximumf>, %290, %cst_137 [1] : vector<8x8xf32> to vector<8xf32>
    %292 = vector.shape_cast %291 : vector<8xf32> to vector<8x1xf32>
    %293 = vector.broadcast %292 : vector<8x1xf32> to vector<8x8xf32>
    %294 = arith.subf %290, %293 : vector<8x8xf32>
    %295 = math.exp %294 : vector<8x8xf32>
    %cst_138 = arith.constant dense<0.000000e+00> : vector<8xf32>
    %296 = vector.multi_reduction <add>, %295, %cst_138 [1] : vector<8x8xf32> to vector<8xf32>
    %297 = vector.shape_cast %296 : vector<8xf32> to vector<8x1xf32>
    %298 = tpu.reciprocal %297 {approx = true} : vector<8x1xf32> -> vector<8x1xf32>
    %299 = vector.broadcast %298 : vector<8x1xf32> to vector<8x8xf32>
    %300 = arith.mulf %295, %299 : vector<8x8xf32>
    %cst_139 = arith.constant dense<0.000000e+00> : vector<8x8xf32>
    %301 = tpu.matmul %300, %281, %cst_139 {dimension_numbers = #tpu.dot_dimension_numbers<[1], [0], [0], [1], [0, 0, 1, 1], [], []>} : vector<8x8xf32>, vector<8x8xf32>, vector<8x8xf32> -> vector<8x8xf32>
    %c1_140 = arith.constant 1 : index
    %c16_141 = arith.constant 16 : index
    %c0_142 = arith.constant 0 : index
    %302 = vector.load %arg5[%c1_140, %c16_141, %c0_142] : memref<2x32x32xf32, #tpu.memory_space<vmem>>, vector<1x8x32xf32>
    %303 = vector.shape_cast %302 : vector<1x8x32xf32> to vector<8x32xf32>
    %cst_143 = arith.constant dense<0.000000e+00> : vector<8x32xf32>
    %304 = tpu.matmul %301, %303, %cst_143 {dimension_numbers = #tpu.dot_dimension_numbers<[1], [0], [0], [1], [0, 0, 1, 1], [], []>} : vector<8x8xf32>, vector<8x32xf32>, vector<8x32xf32> -> vector<8x32xf32>
    %305 = arith.addf %278, %304 : vector<8x32xf32>
    %306 = vector.extract_strided_slice %223 {offsets = [0, 24], sizes = [8, 8], strides = [1, 1]} : vector<8x96xf32> to vector<8x8xf32>
    %307 = vector.extract_strided_slice %223 {offsets = [0, 56], sizes = [8, 8], strides = [1, 1]} : vector<8x96xf32> to vector<8x8xf32>
    %308 = vector.extract_strided_slice %223 {offsets = [0, 88], sizes = [8, 8], strides = [1, 1]} : vector<8x96xf32> to vector<8x8xf32>
    %cst_144 = arith.constant dense<0.000000e+00> : vector<8x8xf32>
    %309 = tpu.matmul %306, %307, %cst_144 {dimension_numbers = #tpu.dot_dimension_numbers<[1], [1], [0], [0], [0, 0, 1, 0], [], []>} : vector<8x8xf32>, vector<8x8xf32>, vector<8x8xf32> -> vector<8x8xf32>
    %cst_145 = arith.constant 0.353553385 : f32
    %310 = vector.broadcast %cst_145 : f32 to vector<8x8xf32>
    %311 = arith.mulf %309, %310 : vector<8x8xf32>
    %cst_146 = arith.constant 0.000000e+00 : f32
    %312 = vector.broadcast %cst_146 : f32 to vector<1x8xf32>
    %313 = arith.cmpf oeq, %3, %312 : vector<1x8xf32>
    %cst_147 = arith.constant -1.000000e+09 : f32
    %314 = vector.shape_cast %313 : vector<1x8xi1> to vector<1x8xi1>
    %315 = vector.broadcast %314 : vector<1x8xi1> to vector<8x8xi1>
    %316 = vector.broadcast %cst_147 : f32 to vector<8x8xf32>
    %317 = arith.select %315, %316, %311 : vector<8x8xi1>, vector<8x8xf32>
    %cst_148 = arith.constant dense<0xFF800000> : vector<8xf32>
    %318 = vector.multi_reduction <maximumf>, %317, %cst_148 [1] : vector<8x8xf32> to vector<8xf32>
    %319 = vector.shape_cast %318 : vector<8xf32> to vector<8x1xf32>
    %320 = vector.broadcast %319 : vector<8x1xf32> to vector<8x8xf32>
    %321 = arith.subf %317, %320 : vector<8x8xf32>
    %322 = math.exp %321 : vector<8x8xf32>
    %cst_149 = arith.constant dense<0.000000e+00> : vector<8xf32>
    %323 = vector.multi_reduction <add>, %322, %cst_149 [1] : vector<8x8xf32> to vector<8xf32>
    %324 = vector.shape_cast %323 : vector<8xf32> to vector<8x1xf32>
    %325 = tpu.reciprocal %324 {approx = true} : vector<8x1xf32> -> vector<8x1xf32>
    %326 = vector.broadcast %325 : vector<8x1xf32> to vector<8x8xf32>
    %327 = arith.mulf %322, %326 : vector<8x8xf32>
    %cst_150 = arith.constant dense<0.000000e+00> : vector<8x8xf32>
    %328 = tpu.matmul %327, %308, %cst_150 {dimension_numbers = #tpu.dot_dimension_numbers<[1], [0], [0], [1], [0, 0, 1, 1], [], []>} : vector<8x8xf32>, vector<8x8xf32>, vector<8x8xf32> -> vector<8x8xf32>
    %c1_151 = arith.constant 1 : index
    %c24_152 = arith.constant 24 : index
    %c0_153 = arith.constant 0 : index
    %329 = vector.load %arg5[%c1_151, %c24_152, %c0_153] : memref<2x32x32xf32, #tpu.memory_space<vmem>>, vector<1x8x32xf32>
    %330 = vector.shape_cast %329 : vector<1x8x32xf32> to vector<8x32xf32>
    %cst_154 = arith.constant dense<0.000000e+00> : vector<8x32xf32>
    %331 = tpu.matmul %328, %330, %cst_154 {dimension_numbers = #tpu.dot_dimension_numbers<[1], [0], [0], [1], [0, 0, 1, 1], [], []>} : vector<8x8xf32>, vector<8x32xf32>, vector<8x32xf32> -> vector<8x32xf32>
    %332 = arith.addf %305, %331 : vector<8x32xf32>
    %333 = arith.addf %191, %332 : vector<8x32xf32>
    %c1_155 = arith.constant 1 : index
    %c0_156 = arith.constant 0 : index
    %c0_157 = arith.constant 0 : index
    %334 = vector.load %arg6[%c1_155, %c0_156, %c0_157] : memref<2x1x32xf32, #tpu.memory_space<vmem>>, vector<1x1x32xf32>
    %335 = vector.shape_cast %334 : vector<1x1x32xf32> to vector<1x32xf32>
    %336 = vector.broadcast %335 : vector<1x32xf32> to vector<8x32xf32>
    %337 = arith.addf %333, %336 : vector<8x32xf32>
    %c1_158 = arith.constant 1 : index
    %c0_159 = arith.constant 0 : index
    %c0_160 = arith.constant 0 : index
    %338 = vector.load %arg13[%c1_158, %c0_159, %c0_160] : memref<2x1x32xf32, #tpu.memory_space<vmem>>, vector<1x1x32xf32>
    %339 = vector.shape_cast %338 : vector<1x1x32xf32> to vector<1x32xf32>
    %c1_161 = arith.constant 1 : index
    %c0_162 = arith.constant 0 : index
    %c0_163 = arith.constant 0 : index
    %340 = vector.load %arg14[%c1_161, %c0_162, %c0_163] : memref<2x1x32xf32, #tpu.memory_space<vmem>>, vector<1x1x32xf32>
    %341 = vector.shape_cast %340 : vector<1x1x32xf32> to vector<1x32xf32>
    %cst_164 = arith.constant dense<0.000000e+00> : vector<8xf32>
    %342 = vector.multi_reduction <add>, %337, %cst_164 [1] : vector<8x32xf32> to vector<8xf32>
    %343 = vector.shape_cast %342 : vector<8xf32> to vector<8x1xf32>
    %cst_165 = arith.constant 3.200000e+01 : f32
    %344 = vector.broadcast %cst_165 : f32 to vector<8x1xf32>
    %345 = arith.divf %343, %344 : vector<8x1xf32>
    %346 = vector.broadcast %345 : vector<8x1xf32> to vector<8x32xf32>
    %347 = arith.subf %337, %346 : vector<8x32xf32>
    %348 = arith.mulf %347, %347 : vector<8x32xf32>
    %cst_166 = arith.constant dense<0.000000e+00> : vector<8xf32>
    %349 = vector.multi_reduction <add>, %348, %cst_166 [1] : vector<8x32xf32> to vector<8xf32>
    %350 = vector.shape_cast %349 : vector<8xf32> to vector<8x1xf32>
    %cst_167 = arith.constant 0.0322580636 : f32
    %351 = vector.broadcast %cst_167 : f32 to vector<8x1xf32>
    %352 = arith.mulf %350, %351 : vector<8x1xf32>
    %353 = math.sqrt %352 : vector<8x1xf32>
    %cst_168 = arith.constant 9.99999997E-7 : f32
    %354 = vector.broadcast %cst_168 : f32 to vector<8x1xf32>
    %355 = arith.addf %353, %354 : vector<8x1xf32>
    %356 = tpu.reciprocal %355 {approx = true} : vector<8x1xf32> -> vector<8x1xf32>
    %357 = vector.broadcast %339 : vector<1x32xf32> to vector<8x32xf32>
    %358 = arith.mulf %357, %347 : vector<8x32xf32>
    %359 = vector.broadcast %356 : vector<8x1xf32> to vector<8x32xf32>
    %360 = arith.mulf %358, %359 : vector<8x32xf32>
    %361 = vector.broadcast %341 : vector<1x32xf32> to vector<8x32xf32>
    %362 = arith.addf %360, %361 : vector<8x32xf32>
    %c1_169 = arith.constant 1 : index
    %c0_170 = arith.constant 0 : index
    %c0_171 = arith.constant 0 : index
    %363 = vector.load %arg7[%c1_169, %c0_170, %c0_171] : memref<2x32x64xf32, #tpu.memory_space<vmem>>, vector<1x32x64xf32>
    %364 = vector.shape_cast %363 : vector<1x32x64xf32> to vector<32x64xf32>
    %cst_172 = arith.constant dense<0.000000e+00> : vector<8x64xf32>
    %365 = tpu.matmul %362, %364, %cst_172 {dimension_numbers = #tpu.dot_dimension_numbers<[1], [0], [0], [1], [0, 0, 1, 1], [], []>} : vector<8x32xf32>, vector<32x64xf32>, vector<8x64xf32> -> vector<8x64xf32>
    %c1_173 = arith.constant 1 : index
    %c0_174 = arith.constant 0 : index
    %c0_175 = arith.constant 0 : index
    %366 = vector.load %arg8[%c1_173, %c0_174, %c0_175] : memref<2x1x64xf32, #tpu.memory_space<vmem>>, vector<1x1x64xf32>
    %367 = vector.shape_cast %366 : vector<1x1x64xf32> to vector<1x64xf32>
    %368 = vector.broadcast %367 : vector<1x64xf32> to vector<8x64xf32>
    %369 = arith.addf %365, %368 : vector<8x64xf32>
    %cst_176 = arith.constant 0.000000e+00 : f32
    %370 = vector.broadcast %cst_176 : f32 to vector<8x64xf32>
    %371 = arith.maximumf %369, %370 : vector<8x64xf32>
    %c1_177 = arith.constant 1 : index
    %c0_178 = arith.constant 0 : index
    %c0_179 = arith.constant 0 : index
    %372 = vector.load %arg9[%c1_177, %c0_178, %c0_179] : memref<2x64x32xf32, #tpu.memory_space<vmem>>, vector<1x64x32xf32>
    %373 = vector.shape_cast %372 : vector<1x64x32xf32> to vector<64x32xf32>
    %cst_180 = arith.constant dense<0.000000e+00> : vector<8x32xf32>
    %374 = tpu.matmul %371, %373, %cst_180 {dimension_numbers = #tpu.dot_dimension_numbers<[1], [0], [0], [1], [0, 0, 1, 1], [], []>} : vector<8x64xf32>, vector<64x32xf32>, vector<8x32xf32> -> vector<8x32xf32>
    %c1_181 = arith.constant 1 : index
    %c0_182 = arith.constant 0 : index
    %c0_183 = arith.constant 0 : index
    %375 = vector.load %arg10[%c1_181, %c0_182, %c0_183] : memref<2x1x32xf32, #tpu.memory_space<vmem>>, vector<1x1x32xf32>
    %376 = vector.shape_cast %375 : vector<1x1x32xf32> to vector<1x32xf32>
    %377 = vector.broadcast %376 : vector<1x32xf32> to vector<8x32xf32>
    %378 = arith.addf %374, %377 : vector<8x32xf32>
    %379 = arith.addf %337, %378 : vector<8x32xf32>
    %c0_184 = arith.constant 0 : index
    %c0_185 = arith.constant 0 : index
    %c0_186 = arith.constant 0 : index
    %380 = vector.load %arg15[%c0_184, %c0_185, %c0_186] : memref<1x1x32xf32, #tpu.memory_space<vmem>>, vector<1x1x32xf32>
    %381 = vector.shape_cast %380 : vector<1x1x32xf32> to vector<1x32xf32>
    %c0_187 = arith.constant 0 : index
    %c0_188 = arith.constant 0 : index
    %c0_189 = arith.constant 0 : index
    %382 = vector.load %arg16[%c0_187, %c0_188, %c0_189] : memref<1x1x32xf32, #tpu.memory_space<vmem>>, vector<1x1x32xf32>
    %383 = vector.shape_cast %382 : vector<1x1x32xf32> to vector<1x32xf32>
    %cst_190 = arith.constant dense<0.000000e+00> : vector<8xf32>
    %384 = vector.multi_reduction <add>, %379, %cst_190 [1] : vector<8x32xf32> to vector<8xf32>
    %385 = vector.shape_cast %384 : vector<8xf32> to vector<8x1xf32>
    %cst_191 = arith.constant 3.200000e+01 : f32
    %386 = vector.broadcast %cst_191 : f32 to vector<8x1xf32>
    %387 = arith.divf %385, %386 : vector<8x1xf32>
    %388 = vector.broadcast %387 : vector<8x1xf32> to vector<8x32xf32>
    %389 = arith.subf %379, %388 : vector<8x32xf32>
    %390 = arith.mulf %389, %389 : vector<8x32xf32>
    %cst_192 = arith.constant dense<0.000000e+00> : vector<8xf32>
    %391 = vector.multi_reduction <add>, %390, %cst_192 [1] : vector<8x32xf32> to vector<8xf32>
    %392 = vector.shape_cast %391 : vector<8xf32> to vector<8x1xf32>
    %cst_193 = arith.constant 0.0322580636 : f32
    %393 = vector.broadcast %cst_193 : f32 to vector<8x1xf32>
    %394 = arith.mulf %392, %393 : vector<8x1xf32>
    %395 = math.sqrt %394 : vector<8x1xf32>
    %cst_194 = arith.constant 9.99999997E-7 : f32
    %396 = vector.broadcast %cst_194 : f32 to vector<8x1xf32>
    %397 = arith.addf %395, %396 : vector<8x1xf32>
    %398 = tpu.reciprocal %397 {approx = true} : vector<8x1xf32> -> vector<8x1xf32>
    %399 = vector.broadcast %381 : vector<1x32xf32> to vector<8x32xf32>
    %400 = arith.mulf %399, %389 : vector<8x32xf32>
    %401 = vector.broadcast %398 : vector<8x1xf32> to vector<8x32xf32>
    %402 = arith.mulf %400, %401 : vector<8x32xf32>
    %403 = vector.broadcast %383 : vector<1x32xf32> to vector<8x32xf32>
    %404 = arith.addf %402, %403 : vector<8x32xf32>
    %c0_195 = arith.constant 0 : index
    %c0_196 = arith.constant 0 : index
    %c0_197 = arith.constant 0 : index
    %405 = vector.load %arg17[%c0_195, %c0_196, %c0_197] : memref<1x8x32xf32, #tpu.memory_space<vmem>>, vector<1x8x32xf32>
    %406 = vector.shape_cast %405 : vector<1x8x32xf32> to vector<8x32xf32>
    %407 = vector.shape_cast %404 : vector<8x32xf32> to vector<1x8x32xf32>
    tpu.vector_store %arg17[%c0_195, %c0_196, %c0_197], %407 {strides = array<i32>} : memref<1x8x32xf32, #tpu.memory_space<vmem>>, vector<1x8x32xf32>,
    return
  }
  func.func @transform_0(%arg0: i32) -> (i32, i32, i32) {
    %c0_i32 = arith.constant 0 : i32
    %c0_i32_0 = arith.constant 0 : i32
    %c0_i32_1 = arith.constant 0 : i32
    return %arg0, %c0_i32, %c0_i32_0 : i32, i32, i32
  }
  func.func @transform_1(%arg0: i32) -> (i32, i32, i32) {
    %c0_i32 = arith.constant 0 : i32
    %c0_i32_0 = arith.constant 0 : i32
    %c0_i32_1 = arith.constant 0 : i32
    return %arg0, %c0_i32, %c0_i32_0 : i32, i32, i32
  }
  func.func @transform_2(%arg0: i32) -> (i32, i32, i32) {
    %c0_i32 = arith.constant 0 : i32
    %c0_i32_0 = arith.constant 0 : i32
    %c0_i32_1 = arith.constant 0 : i32
    %c0_i32_2 = arith.constant 0 : i32
    return %c0_i32, %c0_i32_0, %c0_i32_1 : i32, i32, i32
  }
  func.func @transform_3(%arg0: i32) -> (i32, i32, i32) {
    %c0_i32 = arith.constant 0 : i32
    %c0_i32_0 = arith.constant 0 : i32
    %c0_i32_1 = arith.constant 0 : i32
    %c0_i32_2 = arith.constant 0 : i32
    return %c0_i32, %c0_i32_0, %c0_i32_1 : i32, i32, i32
  }
  func.func @transform_4(%arg0: i32) -> (i32, i32, i32) {
    %c0_i32 = arith.constant 0 : i32
    %c0_i32_0 = arith.constant 0 : i32
    %c0_i32_1 = arith.constant 0 : i32
    %c0_i32_2 = arith.constant 0 : i32
    return %c0_i32, %c0_i32_0, %c0_i32_1 : i32, i32, i32
  }
  func.func @transform_5(%arg0: i32) -> (i32, i32, i32) {
    %c0_i32 = arith.constant 0 : i32
    %c0_i32_0 = arith.constant 0 : i32
    %c0_i32_1 = arith.constant 0 : i32
    %c0_i32_2 = arith.constant 0 : i32
    return %c0_i32, %c0_i32_0, %c0_i32_1 : i32, i32, i32
  }
  func.func @transform_6(%arg0: i32) -> (i32, i32, i32) {
    %c0_i32 = arith.constant 0 : i32
    %c0_i32_0 = arith.constant 0 : i32
    %c0_i32_1 = arith.constant 0 : i32
    %c0_i32_2 = arith.constant 0 : i32
    return %c0_i32, %c0_i32_0, %c0_i32_1 : i32, i32, i32
  }
  func.func @transform_7(%arg0: i32) -> (i32, i32, i32) {
    %c0_i32 = arith.constant 0 : i32
    %c0_i32_0 = arith.constant 0 : i32
    %c0_i32_1 = arith.constant 0 : i32
    %c0_i32_2 = arith.constant 0 : i32
    return %c0_i32, %c0_i32_0, %c0_i32_1 : i32, i32, i32
  }
  func.func @transform_8(%arg0: i32) -> (i32, i32, i32) {
    %c0_i32 = arith.constant 0 : i32
    %c0_i32_0 = arith.constant 0 : i32
    %c0_i32_1 = arith.constant 0 : i32
    %c0_i32_2 = arith.constant 0 : i32
    return %c0_i32, %c0_i32_0, %c0_i32_1 : i32, i32, i32
  }
  func.func @transform_9(%arg0: i32) -> (i32, i32, i32) {
    %c0_i32 = arith.constant 0 : i32
    %c0_i32_0 = arith.constant 0 : i32
    %c0_i32_1 = arith.constant 0 : i32
    %c0_i32_2 = arith.constant 0 : i32
    return %c0_i32, %c0_i32_0, %c0_i32_1 : i32, i32, i32
  }
  func.func @transform_10(%arg0: i32) -> (i32, i32, i32) {
    %c0_i32 = arith.constant 0 : i32
    %c0_i32_0 = arith.constant 0 : i32
    %c0_i32_1 = arith.constant 0 : i32
    %c0_i32_2 = arith.constant 0 : i32
    return %c0_i32, %c0_i32_0, %c0_i32_1 : i32, i32, i32
  }
  func.func @transform_11(%arg0: i32) -> (i32, i32, i32) {
    %c0_i32 = arith.constant 0 : i32
    %c0_i32_0 = arith.constant 0 : i32
    %c0_i32_1 = arith.constant 0 : i32
    %c0_i32_2 = arith.constant 0 : i32
    return %c0_i32, %c0_i32_0, %c0_i32_1 : i32, i32, i32
  }
  func.func @transform_12(%arg0: i32) -> (i32, i32, i32) {
    %c0_i32 = arith.constant 0 : i32
    %c0_i32_0 = arith.constant 0 : i32
    %c0_i32_1 = arith.constant 0 : i32
    %c0_i32_2 = arith.constant 0 : i32
    return %c0_i32, %c0_i32_0, %c0_i32_1 : i32, i32, i32
  }
  func.func @transform_13(%arg0: i32) -> (i32, i32, i32) {
    %c0_i32 = arith.constant 0 : i32
    %c0_i32_0 = arith.constant 0 : i32
    %c0_i32_1 = arith.constant 0 : i32
    %c0_i32_2 = arith.constant 0 : i32
    return %c0_i32, %c0_i32_0, %c0_i32_1 : i32, i32, i32
  }
  func.func @transform_14(%arg0: i32) -> (i32, i32, i32) {
    %c0_i32 = arith.constant 0 : i32
    %c0_i32_0 = arith.constant 0 : i32
    %c0_i32_1 = arith.constant 0 : i32
    %c0_i32_2 = arith.constant 0 : i32
    return %c0_i32, %c0_i32_0, %c0_i32_1 : i32, i32, i32
  }
  func.func @transform_15(%arg0: i32) -> (i32, i32, i32) {
    %c0_i32 = arith.constant 0 : i32
    %c0_i32_0 = arith.constant 0 : i32
    %c0_i32_1 = arith.constant 0 : i32
    %c0_i32_2 = arith.constant 0 : i32
    return %c0_i32, %c0_i32_0, %c0_i32_1 : i32, i32, i32
  }
  func.func @transform_16(%arg0: i32) -> (i32, i32, i32) {
    %c0_i32 = arith.constant 0 : i32
    %c0_i32_0 = arith.constant 0 : i32
    %c0_i32_1 = arith.constant 0 : i32
    return %arg0, %c0_i32, %c0_i32_0 : i32, i32, i32
  }
}

</mosaic_0001>

<bundles_post_ra>
// kernel: tpu_custom_call.1
= control target key start
LH: loop header
LB: loop body
LE: loop exit
PB: predicated region body
PF: predicated region fallthrough
CT: control target
= control target key end

     0   :  { %s4657_s0 = inlined_call_operand.hbm [shape: f32[2,8,32], index: 0, kind: input, shape index: {}]   ;;  %s4658_s1 = inlined_call_operand.vmem [shape: f32[2,1,8], index: 1, kind: input, shape index: {}]   ;;  %s4659_s2 = inlined_call_operand.vmem [shape: f32[2,32,96], index: 2, kind: input, shape index: {}]   ;;  %s4660_s3 = inlined_call_operand.vmem [shape: f32[2,1,96], index: 3, kind: input, shape index: {}]   ;;  %s4661_s4 = inlined_call_operand.vmem [shape: f32[2,32,32], index: 4, kind: input, shape index: {}]   ;;  %s4662_s5 = inlined_call_operand.vmem [shape: f32[2,1,32], index: 5, kind: input, shape index: {}]   ;;  %s4663_s6 = inlined_call_operand.vmem [shape: f32[2,32,64], index: 6, kind: input, shape index: {}]   ;;  %s4664_s7 = inlined_call_operand.vmem [shape: f32[2,1,64], index: 7, kind: input, shape index: {}]   ;;  %s4665_s8 = inlined_call_operand.vmem [shape: f32[2,64,32], index: 8, kind: input, shape index: {}]   ;;  %s4666_s9 = inlined_call_operand.vmem [shape: f32[2,1,32], index: 9, kind: input, shape index: {}]   ;;  %s4667_s10 = inlined_call_operand.vmem [shape: f32[2,1,32], index: 10, kind: input, shape index: {}]   ;;  %s4668_s11 = inlined_call_operand.vmem [shape: f32[2,1,32], index: 11, kind: input, shape index: {}]   ;;  %s4669_s12 = inlined_call_operand.vmem [shape: f32[2,1,32], index: 12, kind: input, shape index: {}]   ;;  %s4670_s13 = inlined_call_operand.vmem [shape: f32[2,1,32], index: 13, kind: input, shape index: {}]   ;;  %s4671_s14 = inlined_call_operand.vmem [shape: f32[1,1,32], index: 14, kind: input, shape index: {}]   ;;  %s4672_s15 = inlined_call_operand.vmem [shape: f32[1,1,32], index: 15, kind: input, shape index: {}]   ;;  %s4673_s16 = inlined_call_operand.hbm [shape: f32[2,8,32], index: 16, kind: output, shape index: {}]  }
   0x1   :  { %4692 = sst [smem:[#allocation12_spill]] %s4657_s0 }
   0x2   :  { %4693 = sst [smem:[#allocation13_spill]] %s4658_s1 }
   0x3   :  { %4694 = sst [smem:[#allocation14_spill]] %s4659_s2 }
   0x4   :  { %4695 = sst [smem:[#allocation15_spill]] %s4660_s3 }
   0x5   :  { %4696 = sst [smem:[#allocation16_spill]] %s4661_s4 }
   0x6   :  { %4697 = sst [smem:[#allocation17_spill]] %s4671_s14 }
   0x7   :  { %4698 = sst [smem:[#allocation18_spill]] %s4672_s15 }
   0x8   :  { %4699 = sst [smem:[#allocation19_spill]] %s4673_s16 }
   0x9   :  { %21 = vsyncpa [#allocation3], 0 }
   0xa   :  { %23 = vsyncpa [#allocation3 + $0x1], 0 }
   0xb   :  { %24 = vsyncpa [#allocation4], 0 }
   0xc   :  { %26 = vsyncpa [#allocation4 + $0x1], 0  ;;  %s4059_s21 = smov 0   ;;  %s4061_s22 = smov 0  }
   0xd   :  { %s4063_s23 = smov 0   ;;  %s4065_s24 = smov 0  }
   0xe LB: > { %4700 = sst [smem:[#allocation8_spill]] %s3943_s21  ;;  %s4080_s25 = sadd.s32 4294967295, %s3955_s24   ;;  %s3955_s24 = sphi %s4065_s24, %s4735_s24   ;;  %s3951_s23 = sphi %s4063_s23, %s4739_s23   ;;  %s3947_s22 = sphi %s4061_s22, %s4738_s22   ;;  %s3943_s21 = sphi %s4059_s21, %s4737_s21  }
   0xf   : > { %s3314_s26 = sadd.s32 4294967294, %s3955_s24   ;;  %s4084_s27 = sadd.s32 1, %s3955_s24  }
  0x10   : > { %4701 = sst [smem:[#allocation9_spill]] %s4084_s27  ;;  %s39_s28 = sadd.s32 1, %s3951_s23 }
  0x11   : > { %s36_s29 = ssub.s32 %s3955_s24, %s4084_s27  ;;  %p46_p0 = scmp.ne.s32.totalorder %s3951_s23, %s3947_s22 }
  0x12   : > { %p37_p1 = scmp.eq.s32.totalorder %s36_s29, 0  ;;  %p47_p2 = scmp.eq.s32.totalorder %s3955_s24, 0 }
  0x13   : > { %p52_p3 = scmp.ne.s32.totalorder %s3947_s22, %s3943_s21  ;;  %p53_p4 = scmp.eq.s32.totalorder %s4080_s25, 0 }
  0x14   : > { %s4096_s30 = scalar_select %p37_p1, %s3951_s23, %s39_s28  }
  0x15   : > { %p4098_p5 = por %p47_p2, %p46_p0  ;;  %p4102_p6 = por %p53_p4, %p52_p3 }
  0x16   : > { %4702 = sst [smem:[#allocation10_spill]] %s4096_s30  ;;  %p396_p7 = scmp.eq.s32.totalorder %s4080_s25, 1 }
  0x17   : > { %p402_p8 = scmp.eq.s32.totalorder %s3314_s26, 1  ;;  %p3758_p10 = scmp.lt.s32.totalorder %s3955_s24, 2 }
  0x18   : > { %p4109_p11 = por %p396_p7, %p46_p0  ;;  %s464_s20 = sand.u32 1, %s3951_s23  }
  0x19   : > { %p4113_p12 = por %p402_p8, %p52_p3  ;;  %s3318_s28 = sshll.u32 %s3955_s24, 7 }
  0x1a   : > { %s4705_s18 = scalar_select %p4109_p11, 1, 0 }
  0x1b   : > { %s4707_s19 = scalar_select %p4113_p12, 1, 0 }
  0x1c   : > { %4706 = sst [smem:[#allocation11_spill]] %s4705_s18  ;;  %s3317_s29 = sshll.u32 %s464_s20, 3 }
  0x1d   : > { %s4708_s21 = sld [smem:[#allocation12_spill]]  ;;  %s468_s26 = scalar_lea.vmem [#allocation2], %s3317_s29 }
  0x1e   : > { %s475_s14 = sshll.u32 %s468_s26, 4  ;;  %p4126_p13 = pnand %p3758_p10, %p4098_p5  ;;  %s4130_s14 = int_to_ptr.vmem [resolvable:$true] %s475_s14 }
  0x1f   : > { %s465_s27 = scalar_lea.sflag [#allocation3], %s464_s20 }
  0x20   : > { %p3861_p3 = pneg %p4126_p13 }
  0x23   : > { %s4709_s16 = smov %s4708_s21  ;;  %s4122_s15 = scalar_lea.hbm %s4708_s21, %s3318_s28 }
  0x24   : > { %s3859_s21 = scalar_lea.hbm %s4122_s15, 128  ;;  %s3864_s28 = scalar_lea.hbm %s4709_s16, 256 }
  0x25   : > { %p3860_p2 = scmp.ne.s32.totalorder %s4122_s15, %s3859_s21  ;;  %p3865_p5 = scmp.lt.u32.totalorder %s4122_s15, %s4709_s16 }
  0x26   : > { %p3866_p8 = scmp.lt.u32.totalorder %s3864_s28, %s3859_s21  ;;  %p3868_p9 = scmp.lt.u32.totalorder %s3859_s21, %s4122_s15 }
  0x27   : > { %p3862_p4 = pnand %p3861_p3, %p3860_p2 }
  0x28   : > { %p3867_p10 = por %p3866_p8, %p3865_p5 }
  0x29   : > { %p3863_p7 = pneg %p3862_p4 }
  0x2a   : > { %p3869_p0 = por %p3868_p9, %p3867_p10 }
  0x2c   : > { %p3870_p1 = pnand %p3869_p0, %p3863_p7 }
  0x2e   : > { %3873 = shalt.err (!%p3870_p1)
}
  0x2f   : > { %s3874_s20 = scalar_lea.vmem %s4130_s14, 128  ;;  %s3957_s30 = smov [#allocation2]  }
  0x30   : > { %p3875_p2 = scmp.ne.s32.totalorder %s4130_s14, %s3874_s20  ;;  %s3879_s0 = sshll.u32 %s3957_s30, 4  ;;  %s3880_s0 = int_to_ptr.vmem [resolvable:$false] %s3879_s0 }
  0x31   : > { %s3881_s29 = scalar_lea.vmem %s3880_s0, 256  ;;  %p3882_p11 = scmp.lt.s32.totalorder %s4130_s14, %s3880_s0 }
  0x32   : > { %p3877_p4 = pnand %p3875_p2, %p3861_p3  ;;  %p3883_p5 = scmp.lt.s32.totalorder %s3881_s29, %s3874_s20 }
  0x34   : > { %p3878_p12 = pneg %p3877_p4  ;;  %p3884_p8 = por %p3883_p5, %p3882_p11 }
  0x36   : > { %p3885_p9 = pnand %p3884_p8, %p3878_p12 }
  0x38   : > { %3888 = shalt.err (!%p3885_p9)
}
  0x39   : > { %3753 = dma.hbm_to_vmem [thread:$0]  (!%p4126_p13), %s4122_s15, 128, %s4130_s14, %s465_s27  }
  0x3a   : > { %p4711_p0 = scmp.lt.s32.totalorder %s3955_s24, 3  ;;  %p4712_p1 = scmp.ge.s32.totalorder %s3955_s24, 1 }
  0x3c   : > { %p487_p3 = pnand %p4712_p1, %p4711_p0 }
  0x3d   : > { %s4164_s21 = sand.u32 (!%p487_p3), 1, %s3947_s22  }
  0x3e   : > { %490 = sbr.rel (%p487_p3) target bundleno = 7725 (0x1e2d), region = 84  ;;  %s4682_s28 = sshll.u32 (!%p487_p3), %s4164_s21, 3 }
  0x3f   : > { %s493_s26 = scalar_lea.sflag (!%p487_p3), [#allocation3], %s4164_s21  ;;  %s496_s18 = scalar_lea.vmem (!%p487_p3), [#allocation2], %s4682_s28 }
  0x45   : > { %3934 = dma.done.wait (%p4102_p6), %s493_s26, 128  }
  0x46   : > { %3936 = vsyncadd (%p4102_p6), %s493_s26, 4294967168  ;;  %vm555_vm0 = vcmask 261120   ;;  %v4174_v0 = vld [vmem:[%s496_s18] sm:$0xff]  ;;  %s4713_s2 = sld [smem:[#allocation14_spill]]  ;;  %v3958_v10 = vmov 0.0|0.0   ;;  %vm3959_vm1 = vmmov 0   ;;  %v756_v36 = vlaneseq }
  0x47   : > { %v556_v1 = vsel %vm555_vm0, %v4174_v0, 0.0  ;;  %3698 = vmatprep.subr.bf16.mxu0 %v3958_v10  ;;  %v3960_v13 = vmov 0.0   ;;  %v3322_v23 = vld [vmem:[%s4667_s10] ss:$0 sm:$0xff]  ;;  %s4714_s3 = sld [smem:[#allocation15_spill]]  ;;  %s4691_s20 = smov 120  }
  0x48   : > { %557 = vadd.xlane.f32.xlu0 %v556_v1  ;;  %3504 = vmatprep.mubr.msk.f32.mxu0 %vm3959_vm1, %v3960_v13  ;;  %v3323_v26 = vld [vmem:[%s4668_s11] ss:$0 sm:$0xff]  ;;  %s3962_s30 = smov 96   ;;  %s3963_s0 = smov 88   ;;  %vm678_vm4 = vcmask 64512   ;;  %v757_v38 = vshrl.u32 %v756_v36, 7 }
  0x49   : > { %3512 = vmatprep.subr.mxu1 %v3960_v13  ;;  %3514 = vmatprep.mubr.msk.f32.mxu1 %vm3959_vm1, %v3960_v13  ;;  %p548_p6 = scmp.lt.s32.totalorder %s4080_s25, 1  ;;  %s4715_s1 = sld [smem:[#allocation13_spill]]  ;;  %v3964_v40 = vmov 0   ;;  %vm1793_vm9 = vcmask 523264  }
  0x4a   : > { %v758_v39 = vsub.s32 0, %v757_v38  ;;  %s4690_s15 = smov 56   ;;  %s4688_s17 = smov 64  }
  0x4b   : > { %s549_s29 = scalar_select %p548_p6, %s4080_s25, 1 }
  0x4c   : > { %v591_v7 = vld [vmem:[%s4713_s2] sm:$0xff]  ;;  %v592_v8 = vld [vmem:[%s4713_s2 + $0x8] sm:$0xff]  ;;  %v593_v9 = vld [vmem:[%s4713_s2 + $0x10] sm:$0xff]  ;;  %s4689_s27 = smov 80   ;;  %s4716_s4 = sld [smem:[#allocation16_spill]] }
  0x4d   : > { %v3699_v11 = vpack.c.bf16 %v592_v8, %v591_v7  ;;  %v594_v12 = vld [vmem:[%s4713_s2 + $0x18] sm:$0xff]  ;;  %v3324_v29 = vld [vmem:[%s4714_s3] ss:$0 sm:$0xff]  ;;  %s4683_s18 = smov 48   ;;  %s4686_s26 = smov 72  }
  0x4e   : > { %v3702_v14 = vpack.c.bf16 %v594_v12, %v593_v9  ;;  %s4685_s28 = smov 40  }
  0x4f   : > { %3700 = vmatpush3.bf16.msra.mxu0 %v3699_v11  ;;  %s550_s14 = scalar_lea.vmem %s4715_s1, %s549_s29  ;;  %s4687_s29 = smov 112  }
  0x50   : > { %3701 = vmatprep.subr.bf16.mxu0 %v3958_v10  ;;  %v552_v37 = vld [vmem:[%s550_s14] sm:$0x1]  ;;  %s4684_s14 = smov 104  }
  0x51   : > { %vm754_vm5 = vcmp.eq.f32.partialorder %v552_v37, 0.0 }
  0x52   : > { %v755_v41 = vsel %vm754_vm5, 1, %v3964_v40  ;;  %v1017_v63 = vld [vmem:[%s4716_s4 + $0x8] sm:$0xff]  ;;  %v849_v9 = vld [vmem:[%s4716_s4] sm:$0xff]  ;;  %v1331_v40 = vld [vmem:[%s4716_s4 + $0x10] sm:$0xff] }
  0x53   : > { %3703 = vmatpush3.bf16.msra.mxu0 %v3702_v14  ;;  %v4236_v42 = vrot.slane %v755_v41, %v758_v39 }
  0x54   : > { %3507 = vmatprep.subr.mxu0 %v3960_v13 }
  0x55   : > { %vm760_vm6 = vcmp.eq.s32.totalorder %v4236_v42, 1  ;;  %v3378_v42 = vld [vmem:[%s4716_s4 + $0x38] sm:$0xff] }
  0xd5   : > { %v558_v2 = vpop.xlane.xlu0 %557 }
  0xd6   : > { %v560_v3 = vmul.f32 0.03125, %v558_v2 }
  0xd8   : > { %v561_v4 = vsub.f32 %v4174_v0, %v560_v3 }
  0xda   : > { %v562_v5 = vmul.f32 %v561_v4, %v561_v4  ;;  %v582_v24 = vmul.f32 %v3322_v23, %v561_v4 }
  0xdc   : > { %v563_v6 = vsel %vm555_vm0, %v562_v5, 0.0 }
  0xdd   : > { %564 = vadd.xlane.f32.xlu0 %v563_v6 }
 0x16a   : > { %v565_v15 = vpop.xlane.xlu0 %564 }
 0x16b   : > { %v566_v16 = vmul.f32 0.032258064, %v565_v15 }
 0x16d   : > { %3807 = vrsqrt.f32 %v566_v16  ;;  %vm569_vm2 = vcmp.eq.f32.partialorder %v566_v16, inf  ;;  %v572_v19 = vand.u32 2147483648, %v566_v16  ;;  %vm571_vm3 = vcmp.eq.f32.partialorder %v566_v16, 0.0 }
 0x177   : > { %v3808_v17 = vpop.eup %3807 }
 0x178   : > { %v568_v18 = vmul.f32 %v3808_v17, %v566_v16 }
 0x17a   : > { %v570_v20 = vsel %vm569_vm2, %v566_v16, %v568_v18 }
 0x17b   : > { %v573_v21 = vsel %vm571_vm3, %v572_v19, %v570_v20 }
 0x17c   : > { %v574_v22 = vadd.f32 1e-06, %v573_v21 }
 0x17e   : > { %3809 = vrcp.f32 %v574_v22 }
 0x188   : > { %v3810_v25 = vpop.eup %3809 }
 0x189   : > { %v583_v27 = vmul.f32 %v3810_v25, %v582_v24 }
 0x18b   : > { %v590_v28 = vadd.f32 %v3323_v26, %v583_v27 }
 0x18d   : > { %3505 = vmatmul.mubr.msk.f32.vlgmr.msra.gmra.mrb[0].mxu0 %vm555_vm0, %v590_v28 }
 0x18e   : > { %3509 = vmatprep.mubr.msk.f32.mxu0 %vm3959_vm1, %v3960_v13 }
 0x260   : > { %v671_v30 = vpop.f32.mrb[0].mxu0 }
 0x261   : > { %v4212_v31 = vadd.f32 %v3324_v29, %v671_v30  ;;  %v3506_v32 = vpop.f32.mrb[1].mxu0 }
 0x263   : > { %850 = vrot.lane.b32.xlu0 %v4212_v31, %s4691_s20  ;;  %676 = vrot.lane.b32.xlu1 %v4212_v31, %s3962_s30  ;;  %s4720_s20 = smov 64  }
 0x267   : > { %852 = vrot.lane.b32.xlu1 %v4212_v31, %s3963_s0 }
 0x2d5   : > { %v677_v33 = vpop.permute.xlu1 %676  ;;  %v851_v35 = vpop.permute.xlu0 %850 }
 0x2d6   : > { %3508 = vmatpush3.xpose.msk.msra.mxu0 %vm678_vm4, %v677_v33 }
 0x2d7   : > { %3517 = vmatprep.subr.mxu0 %v3960_v13 }
 0x2d9   : > { %3510 = vmatmul.mubr.msk.f32.vlgmr.msra.gmra.mrb[2].mxu0 %vm678_vm4, %v4212_v31  ;;  %v853_v34 = vpop.permute.xlu1 %852 }
 0x2da   : > { %3518 = vmatpush3.xpose.msk.msra.mxu0 %vm678_vm4, %v853_v34  ;;  %3519 = vmatprep.mubr.msk.f32.mxu0 %vm3959_vm1, %v3960_v13 }
 0x2db   : > { %3527 = vmatprep.subr.mxu0 %v3960_v13 }
 0x2dd   : > { %3520 = vmatmul.mubr.msk.f32.vlgmr.msra.gmra.mrb[4].mxu0 %vm678_vm4, %v851_v35 }
 0x2de   : > { %3529 = vmatprep.mubr.msk.f32.mxu0 %vm3959_vm1, %v3960_v13  ;;  %3528 = vmatpush3.msra.mxu0 %v1017_v63 }
 0x2df   : > { %3537 = vmatprep.subr.mxu0 %v3960_v13 }
 0x3ac   : > { %v749_v43 = vpop.f32.mrb[2].mxu0 }
 0x3ad   : > { %v753_v44 = vmul.f32 0.35355338, %v749_v43  ;;  %v3511_v45 = vpop.f32.mrb[3].mxu0 }
 0x3af   : > { %v761_v46 = vsel %vm760_vm6, -1e+09, %v753_v44 }
 0x3b0   : > { %v924_v47 = vpop.f32.mrb[4].mxu0  ;;  %v762_v48 = vsel %vm678_vm4, %v761_v46, -inf }
 0x3b1   : > { %v928_v49 = vmul.f32 0.35355338, %v924_v47  ;;  %763 = vmax.xlane.f32.xlu1 %v762_v48  ;;  %v3521_v50 = vpop.f32.mrb[5].mxu0 }
 0x3b3   : > { %v929_v51 = vsel %vm760_vm6, -1e+09, %v928_v49 }
 0x3b4   : > { %v930_v52 = vsel %vm678_vm4, %v929_v51, -inf }
 0x3b5   : > { %931 = vmax.xlane.f32.xlu0 %v930_v52 }
 0x3cb   : > { %941 = vrot.lane.b32.xlu0 %v4212_v31, %s4690_s15  ;;  %s3222_s15 = scalar_lea.sflag [#allocation4], %s4164_s21 }
 0x43e   : > { %v764_v53 = vpop.xlane.xlu1 %763 }
 0x43f   : > { %v765_v54 = vsub.f32 %v761_v46, %v764_v53 }
 0x441   : > { %v766_v55 = vmul.f32 1.442695, %v765_v54  ;;  %v1573_v54 = vld [vmem:[%s4716_s4 + $0x18] sm:$0xff] }
 0x442   : > { %v932_v56 = vpop.xlane.xlu0 %931 }
 0x443   : > { %3811 = vpow2.f32 %v766_v55  ;;  %v933_v57 = vsub.f32 %v929_v51, %v932_v56 }
 0x445   : > { %v934_v58 = vmul.f32 1.442695, %v933_v57 }
 0x446   : > { %v942_v6 = vpop.permute.xlu0 %941 }
 0x447   : > { %3813 = vpow2.f32 %v934_v58 }
 0x44d   : > { %v3812_v59 = vpop.eup %3811 }
 0x44e   : > { %v768_v60 = vsel %vm678_vm4, %v3812_v59, 0.0 }
 0x44f   : > { %769 = vadd.xlane.f32.xlu1 %v768_v60 }
 0x451   : > { %v3814_v61 = vpop.eup %3813 }
 0x452   : > { %v936_v62 = vsel %vm678_vm4, %v3814_v61, 0.0 }
 0x453   : > { %937 = vadd.xlane.f32.xlu1 %v936_v62 }
 0x464   : > { %773 = vrot.lane.b32.xlu1 %v4212_v31, %s4688_s17 }
 0x468   : > { %1166 = vrot.lane.b32.xlu1 %v4212_v31, %s4689_s27 }
 0x46c   : > { %1164 = vrot.lane.b32.xlu1 %v4212_v31, %s4687_s29 }
 0x4dc   : > { %v770_v1 = vpop.xlane.xlu1 %769 }
 0x4dd   : > { %3815 = vrcp.f32 %v770_v1 }
 0x4e0   : > { %v938_v2 = vpop.xlane.xlu1 %937 }
 0x4e1   : > { %3817 = vrcp.f32 %v938_v2 }
 0x4e4   : > { %v774_v3 = vpop.permute.xlu1 %773 }
 0x4e5   : > { %3513 = vmatpush3.msra.mxu1 %v774_v3  ;;  %v3342_v3 = vld [vmem:[%s4662_s5] ss:$0 sm:$0xff] }
 0x4e6   : > { %3522 = vmatprep.subr.mxu1 %v3960_v13 }
 0x4e7   : > { %v3816_v4 = vpop.eup %3815 }
 0x4e8   : > { %v772_v5 = vmul.f32 %v3816_v4, %v3812_v59  ;;  %v1167_v14 = vpop.permute.xlu1 %1166 }
 0x4ea   : > { %3515 = vmatmul.mubr.msk.f32.vlgmr.msra.gmra.mrb[0].mxu1 %vm678_vm4, %v772_v5 }
 0x4eb   : > { %v3818_v7 = vpop.eup %3817  ;;  %3523 = vmatpush3.msra.mxu1 %v942_v6  ;;  %3524 = vmatprep.mubr.msk.f32.mxu1 %vm3959_vm1, %v3960_v13 }
 0x4ec   : > { %v940_v8 = vmul.f32 %v3818_v7, %v3814_v61  ;;  %3532 = vmatprep.subr.mxu1 %v3960_v13  ;;  %v1165_v17 = vpop.permute.xlu1 %1164 }
 0x4ee   : > { %3525 = vmatmul.mubr.msk.f32.vlgmr.msra.gmra.mrb[2].mxu1 %vm678_vm4, %v940_v8 }
 0x4ef   : > { %3534 = vmatprep.mubr.msk.f32.mxu1 %vm3959_vm1, %v3960_v13  ;;  %3533 = vmatpush3.msra.mxu1 %v849_v9 }
 0x4f0   : > { %3542 = vmatprep.subr.mxu1 %v3960_v13 }
 0x5bd   : > { %v845_v11 = vpop.f32.mrb[0].mxu1 }
 0x5be   : > { %v3516_v12 = vpop.f32.mrb[1].mxu1  ;;  %3535 = vmatmul.mubr.msk.f32.vlgmr.msra.gmra.mrb[4].mxu1 %vm678_vm4, %v845_v11 }
 0x5bf   : > { %3544 = vmatprep.mubr.msk.f32.mxu1 %vm3959_vm1, %v3960_v13 }
 0x5c1   : > { %v1013_v15 = vpop.f32.mrb[2].mxu1 }
 0x5c2   : > { %v3526_v16 = vpop.f32.mrb[3].mxu1  ;;  %3530 = vmatmul.mubr.msk.f32.vlgmr.msra.gmra.mrb[6].mxu0 %vm678_vm4, %v1013_v15  ;;  %v1695_v15 = vld [vmem:[%s4663_s6 + $0x10] sm:$0xff] }
 0x5c3   : > { %3538 = vmatpush3.xpose.msk.msra.mxu0 %vm678_vm4, %v1167_v14  ;;  %3539 = vmatprep.mubr.msk.f32.mxu0 %vm3959_vm1, %v3960_v13  ;;  %v1693_v14 = vld [vmem:[%s4663_s6] sm:$0xff] }
 0x5c4   : > { %3547 = vmatprep.subr.mxu0 %v3960_v13 }
 0x5c6   : > { %3540 = vmatmul.mubr.msk.f32.vlgmr.msra.gmra.mrb[8].mxu0 %vm678_vm4, %v1165_v17  ;;  %v1696_v17 = vld [vmem:[%s4663_s6 + $0x18] sm:$0xff] }
 0x5c7   : > { %3549 = vmatprep.mubr.msk.f32.mxu0 %vm3959_vm1, %v3960_v13  ;;  %3548 = vmatpush3.msra.mxu0 %v1331_v40  ;;  %v3344_v40 = vld [vmem:[%s4670_s13] ss:$0 sm:$0xff] }
 0x5c8   : > { %3557 = vmatprep.subr.mxu0 %v3960_v13 }
 0x691   : > { %v1160_v18 = vpop.f32.mrb[4].mxu1 }
 0x692   : > { %v3536_v19 = vpop.f32.mrb[5].mxu1 }
 0x693   : > { %v1778_v19 = vld [vmem:[%s4665_s8] sm:$0xff] }
 0x695   : > { %v1087_v20 = vpop.f32.mrb[6].mxu0 }
 0x696   : > { %v1161_v21 = vadd.f32 %v1160_v18, %v1087_v20  ;;  %v3531_v22 = vpop.f32.mrb[7].mxu0  ;;  %v3708_v18 = vpack.c.bf16 %v1696_v17, %v1695_v15  ;;  %v1779_v20 = vld [vmem:[%s4665_s8 + $0x8] sm:$0xff]  ;;  %v3352_v17 = vld [vmem:[%s4668_s11 + $0x1] ss:$0 sm:$0xff] }
 0x697   : > { %v3711_v22 = vpack.c.bf16 %v1779_v20, %v1778_v19  ;;  %v3358_v20 = vld [vmem:[%s4714_s3 + $0x1] ss:$0 sm:$0xff]  ;;  %s4730_s3 = sld [smem:[#allocation19_spill]] }
 0x699   : > { %v1238_v23 = vpop.f32.mrb[8].mxu0 }
 0x69a   : > { %v1242_v24 = vmul.f32 0.35355338, %v1238_v23  ;;  %v3541_v25 = vpop.f32.mrb[9].mxu0  ;;  %v1781_v23 = vld [vmem:[%s4665_s8 + $0x18] sm:$0xff] }
 0x69b   : > { %v1782_v25 = vld [vmem:[%s4665_s8 + $0x20] sm:$0xff] }
 0x69c   : > { %v1243_v26 = vsel %vm760_vm6, -1e+09, %v1242_v24 }
 0x69d   : > { %v1244_v27 = vsel %vm678_vm4, %v1243_v26, -inf }
 0x69e   : > { %1245 = vmax.xlane.f32.xlu1 %v1244_v27 }
 0x6af   : > { %1255 = vrot.lane.b32.xlu1 %v4212_v31, %s4683_s18  ;;  %s4721_s18 = smov 112  }
 0x6b3   : > { %1406 = vrot.lane.b32.xlu1 %v4212_v31, %s4684_s14  ;;  %s4717_s14 = smov 120  }
 0x72b   : > { %v1246_v28 = vpop.xlane.xlu1 %1245 }
 0x72c   : > { %v1247_v29 = vsub.f32 %v1243_v26, %v1246_v28  ;;  %v1783_v26 = vld [vmem:[%s4665_s8 + $0x28] sm:$0xff] }
 0x72d   : > { %v3717_v27 = vpack.c.bf16 %v1783_v26, %v1782_v25 }
 0x72e   : > { %v1248_v30 = vmul.f32 1.442695, %v1247_v29 }
 0x72f   : > { %v1256_v32 = vpop.permute.xlu1 %1255 }
 0x730   : > { %3819 = vpow2.f32 %v1248_v30  ;;  %3543 = vmatpush3.msra.mxu1 %v1256_v32 }
 0x731   : > { %3552 = vmatprep.subr.mxu1 %v3960_v13 }
 0x733   : > { %v1407_v39 = vpop.permute.xlu1 %1406 }
 0x73a   : > { %v3820_v33 = vpop.eup %3819 }
 0x73b   : > { %v1250_v34 = vsel %vm678_vm4, %v3820_v33, 0.0 }
 0x73c   : > { %1251 = vadd.xlane.f32.xlu0 %v1250_v34 }
 0x752   : > { %1408 = vrot.lane.b32.xlu0 %v4212_v31, %s4686_s26  ;;  %s4722_s26 = smov 72  }
 0x7c9   : > { %v1252_v35 = vpop.xlane.xlu0 %1251 }
 0x7ca   : > { %3821 = vrcp.f32 %v1252_v35 }
 0x7cd   : > { %v1409_v38 = vpop.permute.xlu0 %1408 }
 0x7d4   : > { %v3822_v36 = vpop.eup %3821 }
 0x7d5   : > { %v1254_v37 = vmul.f32 %v3822_v36, %v3820_v33 }
 0x7d7   : > { %3545 = vmatmul.mubr.msk.f32.vlgmr.msra.gmra.mrb[6].mxu1 %vm678_vm4, %v1254_v37  ;;  %v3343_v37 = vld [vmem:[%s4669_s12] ss:$0 sm:$0xff] }
 0x7d8   : > { %3553 = vmatpush3.xpose.msk.msra.mxu1 %vm678_vm4, %v1409_v38  ;;  %3554 = vmatprep.mubr.msk.f32.mxu1 %vm3959_vm1, %v3960_v13 }
 0x7d9   : > { %3562 = vmatprep.subr.mxu1 %v3960_v13 }
 0x7db   : > { %3555 = vmatmul.mubr.msk.f32.vlgmr.msra.gmra.mrb[8].mxu1 %vm678_vm4, %v1407_v39 }
 0x7dc   : > { %3564 = vmatprep.mubr.msk.f32.mxu1 %vm3959_vm1, %v3960_v13  ;;  %3563 = vmatpush3.msra.mxu1 %v1573_v54 }
 0x7dd   : > { %3710 = vmatprep.subr.bf16.mxu1 %v3958_v10 }
 0x8aa   : > { %v1327_v41 = vpop.f32.mrb[6].mxu1 }
 0x8ab   : > { %v3546_v43 = vpop.f32.mrb[7].mxu1  ;;  %3550 = vmatmul.mubr.msk.f32.vlgmr.msra.gmra.mrb[10].mxu0 %vm678_vm4, %v1327_v41 }
 0x8ac   : > { %3559 = vmatprep.mubr.msk.f32.mxu0 %vm3959_vm1, %v3960_v13 }
 0x8ae   : > { %v1480_v44 = vpop.f32.mrb[8].mxu1 }
 0x8af   : > { %v1484_v45 = vmul.f32 0.35355338, %v1480_v44  ;;  %v3556_v46 = vpop.f32.mrb[9].mxu1  ;;  %v1784_v44 = vld [vmem:[%s4665_s8 + $0x30] sm:$0xff] }
 0x8b1   : > { %v1485_v47 = vsel %vm760_vm6, -1e+09, %v1484_v45  ;;  %v1785_v45 = vld [vmem:[%s4665_s8 + $0x38] sm:$0xff] }
 0x8b2   : > { %v1486_v48 = vsel %vm678_vm4, %v1485_v47, -inf  ;;  %v3720_v46 = vpack.c.bf16 %v1785_v45, %v1784_v44 }
 0x8b3   : > { %1487 = vmax.xlane.f32.xlu1 %v1486_v48 }
 0x940   : > { %v1488_v49 = vpop.xlane.xlu1 %1487 }
 0x941   : > { %v1489_v50 = vsub.f32 %v1485_v47, %v1488_v49  ;;  %v3345_v47 = vld [vmem:[%s4664_s7] ss:$0 sm:$0xff] }
 0x943   : > { %v1490_v51 = vmul.f32 1.442695, %v1489_v50 }
 0x945   : > { %3823 = vpow2.f32 %v1490_v51 }
 0x94f   : > { %v3824_v52 = vpop.eup %3823 }
 0x950   : > { %v1492_v53 = vsel %vm678_vm4, %v3824_v52, 0.0 }
 0x951   : > { %1493 = vadd.xlane.f32.xlu0 %v1492_v53 }
 0x967   : > { %1497 = vrot.lane.b32.xlu0 %v4212_v31, %s4685_s28  ;;  %s4723_s28 = smov 104  }
 0x97e   : > { %v1401_v55 = vpop.f32.mrb[10].mxu0 }
 0x97f   : > { %v1405_v56 = vadd.f32 %v1401_v55, %v1161_v21  ;;  %v3551_v57 = vpop.f32.mrb[11].mxu0  ;;  %v1780_v21 = vld [vmem:[%s4665_s8 + $0x10] sm:$0xff] }
 0x980   : > { %v3714_v24 = vpack.c.bf16 %v1781_v23, %v1780_v21 }
 0x9de   : > { %v1494_v58 = vpop.xlane.xlu0 %1493 }
 0x9df   : > { %3825 = vrcp.f32 %v1494_v58 }
 0x9e2   : > { %v1498_v59 = vpop.permute.xlu0 %1497 }
 0x9e3   : > { %3558 = vmatpush3.msra.mxu0 %v1498_v59 }
 0x9e4   : > { %3704 = vmatprep.subr.bf16.mxu0 %v3958_v10 }
 0x9e9   : > { %v3826_v60 = vpop.eup %3825 }
 0x9ea   : > { %v1496_v61 = vmul.f32 %v3826_v60, %v3824_v52  ;;  %v3347_v52 = vld [vmem:[%s4666_s9] ss:$0 sm:$0xff] }
 0x9ec   : > { %3560 = vmatmul.mubr.msk.f32.vlgmr.msra.gmra.mrb[12].mxu0 %vm678_vm4, %v1496_v61 }
 0x9ed   : > { %3575 = vmatprep.mubr.msk.f32.mxu0 %vm3959_vm1, %v3960_v13 }
 0xabf   : > { %v1569_v31 = vpop.f32.mrb[12].mxu0 }
 0xac0   : > { %v3561_v62 = vpop.f32.mrb[13].mxu0  ;;  %3565 = vmatmul.mubr.msk.f32.vlgmr.msra.gmra.mrb[10].mxu1 %vm678_vm4, %v1569_v31 }
 0xac1   : > { %3594 = vmatprep.mubr.msk.f32.mxu1 %vm3959_vm1, %v3960_v13  ;;  %3712 = vmatpush3.bf16.msra.mxu1 %v3711_v22  ;;  %v3353_v62 = vld [vmem:[%s4713_s2 + $0x20] sm:$0xff] }
 0xac2   : > { %3713 = vmatprep.subr.bf16.mxu1 %v3958_v10 }
 0xac5   : > { %3715 = vmatpush3.bf16.msra.mxu1 %v3714_v24 }
 0xac6   : > { %3716 = vmatprep.subr.bf16.mxu1 %v3958_v10 }
 0xac9   : > { %3718 = vmatpush3.bf16.msra.mxu1 %v3717_v27 }
 0xaca   : > { %3719 = vmatprep.subr.bf16.mxu1 %v3958_v10 }
 0xacd   : > { %3721 = vmatpush3.bf16.msra.mxu1 %v3720_v46 }
 0xace   : > { %3613 = vmatprep.subr.mxu1 %v3960_v13 }
 0xb93   : > { %v1643_v63 = vpop.f32.mrb[10].mxu1 }
 0xb94   : > { %v1647_v1 = vadd.f32 %v1643_v63, %v1405_v56  ;;  %v3566_v2 = vpop.f32.mrb[11].mxu1  ;;  %v3354_v63 = vld [vmem:[%s4713_s2 + $0x28] sm:$0xff] }
 0xb95   : > { %v3723_v2 = vpack.c.bf16 %v3354_v63, %v3353_v62 }
 0xb96   : > { %v1648_v4 = vadd.f32 %v1647_v1, %v4174_v0  ;;  %v1694_v0 = vld [vmem:[%s4663_s6 + $0x8] sm:$0xff]  ;;  %v3355_v1 = vld [vmem:[%s4713_s2 + $0x30] sm:$0xff] }
 0xb97   : > { %v3705_v16 = vpack.c.bf16 %v1694_v0, %v1693_v14  ;;  %v3351_v0 = vld [vmem:[%s4667_s10 + $0x1] ss:$0 sm:$0xff] }
 0xb98   : > { %v4329_v5 = vadd.f32 %v3342_v3, %v1648_v4  ;;  %v3356_v3 = vld [vmem:[%s4713_s2 + $0x38] sm:$0xff] }
 0xb99   : > { %3706 = vmatpush3.bf16.msra.mxu0 %v3705_v16  ;;  %v3726_v4 = vpack.c.bf16 %v3356_v3, %v3355_v1 }
 0xb9a   : > { %v1659_v6 = vsel %vm555_vm0, %v4329_v5, 0.0  ;;  %3707 = vmatprep.subr.bf16.mxu0 %v3958_v10 }
 0xb9b   : > { %1660 = vadd.xlane.f32.xlu1 %v1659_v6 }
 0xb9d   : > { %3709 = vmatpush3.bf16.msra.mxu0 %v3708_v18 }
 0xb9e   : > { %3722 = vmatprep.subr.bf16.mxu0 %v3958_v10 }
 0xc28   : > { %v1661_v7 = vpop.xlane.xlu1 %1660 }
 0xc29   : > { %v1662_v8 = vmul.f32 0.03125, %v1661_v7 }
 0xc2b   : > { %v1663_v9 = vsub.f32 %v4329_v5, %v1662_v8 }
 0xc2d   : > { %v1664_v11 = vmul.f32 %v1663_v9, %v1663_v9  ;;  %v1684_v38 = vmul.f32 %v3343_v37, %v1663_v9 }
 0xc2f   : > { %v1665_v12 = vsel %vm555_vm0, %v1664_v11, 0.0 }
 0xc30   : > { %1666 = vadd.xlane.f32.xlu1 %v1665_v12 }
 0xcbd   : > { %v1667_v28 = vpop.xlane.xlu1 %1666 }
 0xcbe   : > { %v1668_v29 = vmul.f32 0.032258064, %v1667_v28 }
 0xcc0   : > { %3827 = vrsqrt.f32 %v1668_v29  ;;  %vm1671_vm7 = vcmp.eq.f32.partialorder %v1668_v29, inf  ;;  %v1674_v33 = vand.u32 2147483648, %v1668_v29  ;;  %vm1673_vm8 = vcmp.eq.f32.partialorder %v1668_v29, 0.0 }
 0xcca   : > { %v3828_v30 = vpop.eup %3827 }
 0xccb   : > { %v1670_v32 = vmul.f32 %v3828_v30, %v1668_v29 }
 0xccd   : > { %v1672_v34 = vsel %vm1671_vm7, %v1668_v29, %v1670_v32 }
 0xcce   : > { %v1675_v35 = vsel %vm1673_vm8, %v1674_v33, %v1672_v34 }
 0xccf   : > { %v1676_v36 = vadd.f32 1e-06, %v1675_v35 }
 0xcd1   : > { %3829 = vrcp.f32 %v1676_v36 }
 0xcdb   : > { %v3830_v39 = vpop.eup %3829 }
 0xcdc   : > { %v1685_v41 = vmul.f32 %v3830_v39, %v1684_v38 }
 0xcde   : > { %v1692_v43 = vadd.f32 %v3344_v40, %v1685_v41 }
 0xce0   : > { %3576 = vmatmul.mubr.msk.f32.vlgmr.msra.gmra.mrb[14].mxu0 %vm555_vm0, %v1692_v43 }
 0xce1   : > { %3605 = vmatprep.mubr.msk.f32.mxu0 %vm3959_vm1, %v3960_v13  ;;  %3724 = vmatpush3.bf16.msra.mxu0 %v3723_v2 }
 0xce2   : > { %3725 = vmatprep.subr.bf16.mxu0 %v3958_v10 }
 0xce5   : > { %3727 = vmatpush3.bf16.msra.mxu0 %v3726_v4 }
 0xce6   : > { %3608 = vmatprep.subr.mxu0 %v3960_v13 }
 0xdb3   : > { %v1773_v48 = vpop.f32.mrb[14].mxu0 }
 0xdb4   : > { %v1774_v49 = vadd.f32 %v3345_v47, %v1773_v48  ;;  %v3577_v50 = vpop.f32.mrb[15].mxu0 }
 0xdb6   : > { %v1777_v51 = vmax.f32 %v1774_v49, 0.0  ;;  %v3367_v49 = vld [vmem:[%s4716_s4 + $0x28] sm:$0xff] }
 0xdb8   : > { %3595 = vmatmul.mubr.msk.f32.vlgmr.msra.gmra.mrb[12].mxu1 %vm1793_vm9, %v1777_v51 }
 0xdb9   : > { %3615 = vmatprep.mubr.msk.f32.mxu1 %vm3959_vm1, %v3960_v13 }
 0xe8b   : > { %v1863_v53 = vpop.f32.mrb[12].mxu1 }
 0xe8c   : > { %v1864_v54 = vadd.f32 %v3347_v52, %v1863_v53  ;;  %v3596_v55 = vpop.f32.mrb[13].mxu1 }
 0xe8e   : > { %v4396_v56 = vadd.f32 %v1864_v54, %v4329_v5 }
 0xe90   : > { %v1872_v57 = vsel %vm555_vm0, %v4396_v56, 0.0 }
 0xe91   : > { %1873 = vadd.xlane.f32.xlu1 %v1872_v57 }
 0xf1e   : > { %v1874_v58 = vpop.xlane.xlu1 %1873 }
 0xf1f   : > { %v1875_v59 = vmul.f32 0.03125, %v1874_v58 }
 0xf21   : > { %v1876_v60 = vsub.f32 %v4396_v56, %v1875_v59  ;;  %v3363_v59 = vld [vmem:[%s4716_s4 + $0x20] sm:$0xff] }
 0xf23   : > { %v1877_v61 = vmul.f32 %v1876_v60, %v1876_v60  ;;  %v1897_v15 = vmul.f32 %v3351_v0, %v1876_v60 }
 0xf25   : > { %v1878_v31 = vsel %vm555_vm0, %v1877_v61, 0.0 }
 0xf26   : > { %1879 = vadd.xlane.f32.xlu1 %v1878_v31 }
 0xfb3   : > { %v1880_v5 = vpop.xlane.xlu1 %1879 }
 0xfb4   : > { %v1881_v6 = vmul.f32 0.032258064, %v1880_v5 }
 0xfb6   : > { %3831 = vrsqrt.f32 %v1881_v6  ;;  %vm1884_vm10 = vcmp.eq.f32.partialorder %v1881_v6, inf  ;;  %v1887_v9 = vand.u32 2147483648, %v1881_v6  ;;  %vm1886_vm11 = vcmp.eq.f32.partialorder %v1881_v6, 0.0 }
 0xfc0   : > { %v3832_v7 = vpop.eup %3831 }
 0xfc1   : > { %v1883_v8 = vmul.f32 %v3832_v7, %v1881_v6 }
 0xfc3   : > { %v1885_v11 = vsel %vm1884_vm10, %v1881_v6, %v1883_v8 }
 0xfc4   : > { %v1888_v12 = vsel %vm1886_vm11, %v1887_v9, %v1885_v11 }
 0xfc5   : > { %v1889_v14 = vadd.f32 1e-06, %v1888_v12 }
 0xfc7   : > { %3833 = vrcp.f32 %v1889_v14 }
 0xfd1   : > { %v3834_v16 = vpop.eup %3833 }
 0xfd2   : > { %v1898_v18 = vmul.f32 %v3834_v16, %v1897_v15 }
 0xfd4   : > { %v1905_v19 = vadd.f32 %v3352_v17, %v1898_v18 }
 0xfd6   : > { %3606 = vmatmul.mubr.msk.f32.vlgmr.msra.gmra.mrb[16].mxu0 %vm555_vm0, %v1905_v19 }
 0xfd7   : > { %3610 = vmatprep.mubr.msk.f32.mxu0 %vm3959_vm1, %v3960_v13 }
0x10a9   : > { %v1988_v21 = vpop.f32.mrb[16].mxu0 }
0x10aa   : > { %v4428_v22 = vadd.f32 %v3358_v20, %v1988_v21  ;;  %v3607_v23 = vpop.f32.mrb[17].mxu0 }
0x10ac   : > { %2162 = vrot.lane.b32.xlu0 %v4428_v22, %s3963_s0  ;;  %1993 = vrot.lane.b32.xlu1 %v4428_v22, %s3962_s30  ;;  %s4718_s30 = smov 56   ;;  %s4719_s0 = smov 80  }
0x10b0   : > { %2160 = vrot.lane.b32.xlu0 %v4428_v22, %s4717_s14  ;;  %s4724_s14 = smov 48  }
0x111e   : > { %v1994_v24 = vpop.permute.xlu1 %1993  ;;  %v2163_v25 = vpop.permute.xlu0 %2162 }
0x111f   : > { %3609 = vmatpush3.xpose.msk.msra.mxu0 %vm678_vm4, %v1994_v24 }
0x1120   : > { %3618 = vmatprep.subr.mxu0 %v3960_v13 }
0x1122   : > { %3611 = vmatmul.mubr.msk.f32.vlgmr.msra.gmra.mrb[18].mxu0 %vm678_vm4, %v4428_v22  ;;  %v2161_v26 = vpop.permute.xlu0 %2160 }
0x1123   : > { %3619 = vmatpush3.xpose.msk.msra.mxu0 %vm678_vm4, %v2163_v25  ;;  %3620 = vmatprep.mubr.msk.f32.mxu0 %vm3959_vm1, %v3960_v13  ;;  %v3373_v25 = vld [vmem:[%s4716_s4 + $0x30] sm:$0xff] }
0x1124   : > { %3628 = vmatprep.subr.mxu0 %v3960_v13 }
0x1126   : > { %3621 = vmatmul.mubr.msk.f32.vlgmr.msra.gmra.mrb[20].mxu0 %vm678_vm4, %v2161_v26 }
0x1127   : > { %3630 = vmatprep.mubr.msk.f32.mxu0 %vm3959_vm1, %v3960_v13  ;;  %3629 = vmatpush3.msra.mxu0 %v3367_v49 }
0x1128   : > { %3638 = vmatprep.subr.mxu0 %v3960_v13 }
0x11f5   : > { %v2065_v27 = vpop.f32.mrb[18].mxu0 }
0x11f6   : > { %v2069_v28 = vmul.f32 0.35355338, %v2065_v27  ;;  %v3612_v29 = vpop.f32.mrb[19].mxu0 }
0x11f8   : > { %v2070_v30 = vsel %vm760_vm6, -1e+09, %v2069_v28 }
0x11f9   : > { %v2234_v32 = vpop.f32.mrb[20].mxu0  ;;  %v2071_v33 = vsel %vm678_vm4, %v2070_v30, -inf }
0x11fa   : > { %v2238_v34 = vmul.f32 0.35355338, %v2234_v32  ;;  %2072 = vmax.xlane.f32.xlu0 %v2071_v33  ;;  %v3622_v35 = vpop.f32.mrb[21].mxu0 }
0x11fc   : > { %v2239_v36 = vsel %vm760_vm6, -1e+09, %v2238_v34 }
0x11fd   : > { %v2240_v37 = vsel %vm678_vm4, %v2239_v36, -inf }
0x11fe   : > { %2241 = vmax.xlane.f32.xlu1 %v2240_v37 }
0x120f   : > { %2251 = vrot.lane.b32.xlu1 %v4428_v22, %s4718_s30 }
0x1213   : > { %2476 = vrot.lane.b32.xlu1 %v4428_v22, %s4719_s0  ;;  %s4728_s0 = sld [smem:[#allocation18_spill]] }
0x1287   : > { %v2073_v38 = vpop.xlane.xlu0 %2072 }
0x1288   : > { %v2074_v39 = vsub.f32 %v2070_v30, %v2073_v38 }
0x128a   : > { %v2075_v40 = vmul.f32 1.442695, %v2074_v39 }
0x128b   : > { %v2242_v41 = vpop.xlane.xlu1 %2241 }
0x128c   : > { %3835 = vpow2.f32 %v2075_v40  ;;  %v2243_v43 = vsub.f32 %v2239_v36, %v2242_v41 }
0x128e   : > { %v2244_v44 = vmul.f32 1.442695, %v2243_v43 }
0x128f   : > { %v2252_v55 = vpop.permute.xlu1 %2251 }
0x1290   : > { %3837 = vpow2.f32 %v2244_v44 }
0x1293   : > { %v2477_v62 = vpop.permute.xlu1 %2476 }
0x1296   : > { %v3836_v45 = vpop.eup %3835 }
0x1297   : > { %v2077_v46 = vsel %vm678_vm4, %v3836_v45, 0.0 }
0x1298   : > { %2078 = vadd.xlane.f32.xlu0 %v2077_v46 }
0x129a   : > { %v3838_v47 = vpop.eup %3837 }
0x129b   : > { %v2246_v48 = vsel %vm678_vm4, %v3838_v47, 0.0 }
0x129c   : > { %2247 = vadd.xlane.f32.xlu0 %v2246_v48 }
0x12b2   : > { %2082 = vrot.lane.b32.xlu0 %v4428_v22, %s4720_s20  ;;  %s4725_s20 = smov 40  }
0x12b6   : > { %2474 = vrot.lane.b32.xlu0 %v4428_v22, %s4721_s18  ;;  %s4729_s18 = sshll.u32 %s4164_s21, 3 }
0x12b7   : > { %s547_s17 = scalar_lea.vmem [#allocation5], %s4729_s18 }
0x12b8   : > { %s3235_s29 = sshll.u32 %s547_s17, 4  ;;  %s4614_s29 = int_to_ptr.vmem [resolvable:$true] %s3235_s29 }
0x12b9   : > { %s3889_s27 = scalar_lea.vmem %s4614_s29, 128 }
0x12ba   : > { %p3890_p11 = scmp.ne.s32.totalorder %s4614_s29, %s3889_s27 }
0x1325   : > { %v2079_v50 = vpop.xlane.xlu0 %2078 }
0x1326   : > { %3839 = vrcp.f32 %v2079_v50 }
0x1329   : > { %v2248_v51 = vpop.xlane.xlu0 %2247 }
0x132a   : > { %3841 = vrcp.f32 %v2248_v51  ;;  %v3381_v51 = vld [vmem:[%s4662_s5 + $0x1] ss:$0 sm:$0xff] }
0x132d   : > { %v2083_v52 = vpop.permute.xlu0 %2082 }
0x132e   : > { %3614 = vmatpush3.msra.mxu1 %v2083_v52 }
0x132f   : > { %3623 = vmatprep.subr.mxu1 %v3960_v13 }
0x1330   : > { %v3840_v53 = vpop.eup %3839 }
0x1331   : > { %v2081_v54 = vmul.f32 %v3840_v53, %v3836_v45  ;;  %v2475_v1 = vpop.permute.xlu0 %2474 }
0x1333   : > { %3616 = vmatmul.mubr.msk.f32.vlgmr.msra.gmra.mrb[14].mxu1 %vm678_vm4, %v2081_v54 }
0x1334   : > { %v3842_v57 = vpop.eup %3841  ;;  %3624 = vmatpush3.msra.mxu1 %v2252_v55  ;;  %3625 = vmatprep.mubr.msk.f32.mxu1 %vm3959_vm1, %v3960_v13 }
0x1335   : > { %v2250_v58 = vmul.f32 %v3842_v57, %v3838_v47  ;;  %3633 = vmatprep.subr.mxu1 %v3960_v13 }
0x1337   : > { %3626 = vmatmul.mubr.msk.f32.vlgmr.msra.gmra.mrb[16].mxu1 %vm678_vm4, %v2250_v58 }
0x1338   : > { %3635 = vmatprep.mubr.msk.f32.mxu1 %vm3959_vm1, %v3960_v13  ;;  %3634 = vmatpush3.msra.mxu1 %v3363_v59 }
0x1339   : > { %3643 = vmatprep.subr.mxu1 %v3960_v13 }
0x1406   : > { %v2154_v60 = vpop.f32.mrb[14].mxu1 }
0x1407   : > { %v3617_v61 = vpop.f32.mrb[15].mxu1  ;;  %3636 = vmatmul.mubr.msk.f32.vlgmr.msra.gmra.mrb[18].mxu1 %vm678_vm4, %v2154_v60  ;;  %v3386_v60 = vld [vmem:[%s4663_s6 + $0x20] sm:$0xff] }
0x1408   : > { %3645 = vmatprep.mubr.msk.f32.mxu1 %vm3959_vm1, %v3960_v13  ;;  %v3388_v61 = vld [vmem:[%s4663_s6 + $0x30] sm:$0xff] }
0x140a   : > { %v2323_v31 = vpop.f32.mrb[16].mxu1 }
0x140b   : > { %v3627_v63 = vpop.f32.mrb[17].mxu1  ;;  %3631 = vmatmul.mubr.msk.f32.vlgmr.msra.gmra.mrb[22].mxu0 %vm678_vm4, %v2323_v31 }
0x140c   : > { %3639 = vmatpush3.xpose.msk.msra.mxu0 %vm678_vm4, %v2477_v62  ;;  %3640 = vmatprep.mubr.msk.f32.mxu0 %vm3959_vm1, %v3960_v13  ;;  %v3389_v62 = vld [vmem:[%s4663_s6 + $0x38] sm:$0xff] }
0x140d   : > { %3648 = vmatprep.subr.mxu0 %v3960_v13  ;;  %v3732_v63 = vpack.c.bf16 %v3389_v62, %v3388_v61 }
0x140f   : > { %3641 = vmatmul.mubr.msk.f32.vlgmr.msra.gmra.mrb[24].mxu0 %vm678_vm4, %v2475_v1  ;;  %v3393_v1 = vld [vmem:[%s4665_s8 + $0x40] sm:$0xff] }
0x1410   : > { %3650 = vmatprep.mubr.msk.f32.mxu0 %vm3959_vm1, %v3960_v13  ;;  %3649 = vmatpush3.msra.mxu0 %v3373_v25  ;;  %v3399_v25 = vld [vmem:[%s4665_s8 + $0x70] sm:$0xff] }
0x1411   : > { %3658 = vmatprep.subr.mxu0 %v3960_v13 }
0x14da   : > { %v2470_v2 = vpop.f32.mrb[18].mxu1 }
0x14db   : > { %v3637_v3 = vpop.f32.mrb[19].mxu1 }
0x14dc   : > { %v3395_v3 = vld [vmem:[%s4665_s8 + $0x50] sm:$0xff] }
0x14de   : > { %v2397_v4 = vpop.f32.mrb[22].mxu0 }
0x14df   : > { %v2471_v5 = vadd.f32 %v2470_v2, %v2397_v4  ;;  %v3632_v6 = vpop.f32.mrb[23].mxu0  ;;  %v3394_v2 = vld [vmem:[%s4665_s8 + $0x48] sm:$0xff] }
0x14e0   : > { %v3735_v4 = vpack.c.bf16 %v3394_v2, %v3393_v1 }
0x14e2   : > { %v2548_v7 = vpop.f32.mrb[24].mxu0 }
0x14e3   : > { %v2552_v8 = vmul.f32 0.35355338, %v2548_v7  ;;  %v3642_v9 = vpop.f32.mrb[25].mxu0  ;;  %v3397_v7 = vld [vmem:[%s4665_s8 + $0x60] sm:$0xff] }
0x14e5   : > { %v2553_v11 = vsel %vm760_vm6, -1e+09, %v2552_v8  ;;  %v3398_v8 = vld [vmem:[%s4665_s8 + $0x68] sm:$0xff] }
0x14e6   : > { %v2554_v12 = vsel %vm678_vm4, %v2553_v11, -inf  ;;  %v3741_v9 = vpack.c.bf16 %v3398_v8, %v3397_v7 }
0x14e7   : > { %2555 = vmax.xlane.f32.xlu1 %v2554_v12 }
0x14f8   : > { %2718 = vrot.lane.b32.xlu1 %v4428_v22, %s4722_s26  ;;  %s4726_s26 = sld [smem:[#allocation17_spill]] }
0x14fc   : > { %2716 = vrot.lane.b32.xlu1 %v4428_v22, %s4723_s28  ;;  %s4727_s28 = sld [smem:[#allocation11_spill]] }
0x1502   : > { %p4731_p12 = scmp.ne.s32.totalorder %s4727_s28, 0 }
0x1504   : > { %p3891_p13 = pnand %p3890_p11, %p4731_p12 }
0x1506   : > { %p3892_p7 = pneg %p3891_p13 }
0x1574   : > { %v2556_v14 = vpop.xlane.xlu1 %2555 }
0x1575   : > { %v2557_v0 = vsub.f32 %v2553_v11, %v2556_v14 }
0x1577   : > { %v2558_v15 = vmul.f32 1.442695, %v2557_v0 }
0x1578   : > { %v2719_v21 = vpop.permute.xlu1 %2718 }
0x1579   : > { %3843 = vpow2.f32 %v2558_v15 }
0x157c   : > { %v2717_v24 = vpop.permute.xlu1 %2716 }
0x1583   : > { %v3844_v16 = vpop.eup %3843 }
0x1584   : > { %v2560_v17 = vsel %vm678_vm4, %v3844_v16, 0.0 }
0x1585   : > { %2561 = vadd.xlane.f32.xlu0 %v2560_v17 }
0x159b   : > { %2565 = vrot.lane.b32.xlu0 %v4428_v22, %s4724_s14 }
0x1612   : > { %v2562_v18 = vpop.xlane.xlu0 %2561 }
0x1613   : > { %3845 = vrcp.f32 %v2562_v18 }
0x1616   : > { %v2566_v19 = vpop.permute.xlu0 %2565 }
0x1617   : > { %3644 = vmatpush3.msra.mxu1 %v2566_v19  ;;  %v3384_v19 = vld [vmem:[%s4669_s12 + $0x1] ss:$0 sm:$0xff] }
0x1618   : > { %3653 = vmatprep.subr.mxu1 %v3960_v13 }
0x161d   : > { %v3846_v20 = vpop.eup %3845 }
0x161e   : > { %v2564_v23 = vmul.f32 %v3846_v20, %v3844_v16 }
0x1620   : > { %3646 = vmatmul.mubr.msk.f32.vlgmr.msra.gmra.mrb[20].mxu1 %vm678_vm4, %v2564_v23 }
0x1621   : > { %3654 = vmatpush3.xpose.msk.msra.mxu1 %vm678_vm4, %v2719_v21  ;;  %3655 = vmatprep.mubr.msk.f32.mxu1 %vm3959_vm1, %v3960_v13 }
0x1622   : > { %3663 = vmatprep.subr.mxu1 %v3960_v13 }
0x1624   : > { %3656 = vmatmul.mubr.msk.f32.vlgmr.msra.gmra.mrb[22].mxu1 %vm678_vm4, %v2717_v24 }
0x1625   : > { %3665 = vmatprep.mubr.msk.f32.mxu1 %vm3959_vm1, %v3960_v13  ;;  %3664 = vmatpush3.msra.mxu1 %v3378_v42 }
0x1626   : > { %3734 = vmatprep.subr.bf16.mxu1 %v3958_v10 }
0x16f3   : > { %v2637_v26 = vpop.f32.mrb[20].mxu1 }
0x16f4   : > { %v3647_v27 = vpop.f32.mrb[21].mxu1  ;;  %3651 = vmatmul.mubr.msk.f32.vlgmr.msra.gmra.mrb[26].mxu0 %vm678_vm4, %v2637_v26  ;;  %v3400_v26 = vld [vmem:[%s4665_s8 + $0x78] sm:$0xff] }
0x16f5   : > { %3660 = vmatprep.mubr.msk.f32.mxu0 %vm3959_vm1, %v3960_v13  ;;  %v3744_v27 = vpack.c.bf16 %v3400_v26, %v3399_v25 }
0x16f7   : > { %v2790_v28 = vpop.f32.mrb[22].mxu1 }
0x16f8   : > { %v2794_v29 = vmul.f32 0.35355338, %v2790_v28  ;;  %v3657_v30 = vpop.f32.mrb[23].mxu1  ;;  %v3391_v28 = vld [vmem:[%s4664_s7 + $0x1] ss:$0 sm:$0xff] }
0x16fa   : > { %v2795_v32 = vsel %vm760_vm6, -1e+09, %v2794_v29 }
0x16fb   : > { %v2796_v33 = vsel %vm678_vm4, %v2795_v32, -inf }
0x16fc   : > { %2797 = vmax.xlane.f32.xlu0 %v2796_v33 }
0x1712   : > { %2807 = vrot.lane.b32.xlu0 %v4428_v22, %s4725_s20  ;;  %s3407_s20 = sshll.u32 %s4080_s25, 7  ;;  %s3973_s25 = smov [#allocation5]  }
0x1713   : > { %s4612_s4 = scalar_lea.hbm %s4730_s3, %s3407_s20 }
0x1789   : > { %v2798_v34 = vpop.xlane.xlu0 %2797 }
0x178a   : > { %v2799_v35 = vsub.f32 %v2795_v32, %v2798_v34  ;;  %v3402_v34 = vld [vmem:[%s4666_s9 + $0x1] ss:$0 sm:$0xff] }
0x178c   : > { %v2800_v36 = vmul.f32 1.442695, %v2799_v35 }
0x178d   : > { %v2808_v37 = vpop.permute.xlu0 %2807 }
0x178e   : > { %3847 = vpow2.f32 %v2800_v36  ;;  %3659 = vmatpush3.msra.mxu0 %v2808_v37 }
0x178f   : > { %3728 = vmatprep.subr.bf16.mxu0 %v3958_v10 }
0x1798   : > { %v3848_v38 = vpop.eup %3847 }
0x1799   : > { %v2802_v39 = vsel %vm678_vm4, %v3848_v38, 0.0 }
0x179a   : > { %2803 = vadd.xlane.f32.xlu1 %v2802_v39 }
0x17c7   : > { %v2711_v22 = vpop.f32.mrb[26].mxu0 }
0x17c8   : > { %v2715_v40 = vadd.f32 %v2711_v22, %v2471_v5  ;;  %v3652_v41 = vpop.f32.mrb[27].mxu0  ;;  %v3396_v5 = vld [vmem:[%s4665_s8 + $0x58] sm:$0xff] }
0x17c9   : > { %v3738_v6 = vpack.c.bf16 %v3396_v5, %v3395_v3 }
0x1827   : > { %v2804_v43 = vpop.xlane.xlu1 %2803 }
0x1828   : > { %3849 = vrcp.f32 %v2804_v43 }
0x1832   : > { %v3850_v44 = vpop.eup %3849 }
0x1833   : > { %v2806_v45 = vmul.f32 %v3850_v44, %v3848_v38 }
0x1835   : > { %3661 = vmatmul.mubr.msk.f32.vlgmr.msra.gmra.mrb[28].mxu0 %vm678_vm4, %v2806_v45 }
0x1836   : > { %3676 = vmatprep.mubr.msk.f32.mxu0 %vm3959_vm1, %v3960_v13 }
0x1908   : > { %v2879_v46 = vpop.f32.mrb[28].mxu0 }
0x1909   : > { %v3662_v47 = vpop.f32.mrb[29].mxu0  ;;  %3666 = vmatmul.mubr.msk.f32.vlgmr.msra.gmra.mrb[24].mxu1 %vm678_vm4, %v2879_v46 }
0x190a   : > { %3695 = vmatprep.mubr.msk.f32.mxu1 %vm3959_vm1, %v3960_v13  ;;  %3736 = vmatpush3.bf16.msra.mxu1 %v3735_v4 }
0x190b   : > { %3737 = vmatprep.subr.bf16.mxu1 %v3958_v10 }
0x190e   : > { %3739 = vmatpush3.bf16.msra.mxu1 %v3738_v6 }
0x190f   : > { %3740 = vmatprep.subr.bf16.mxu1 %v3958_v10 }
0x1912   : > { %3742 = vmatpush3.bf16.msra.mxu1 %v3741_v9 }
0x1913   : > { %3743 = vmatprep.subr.bf16.mxu1 %v3958_v10 }
0x1916   : > { %3745 = vmatpush3.bf16.msra.mxu1 %v3744_v27 }
0x19dc   : > { %v2953_v48 = vpop.f32.mrb[24].mxu1 }
0x19dd   : > { %v2957_v49 = vadd.f32 %v2953_v48, %v2715_v40  ;;  %v3667_v50 = vpop.f32.mrb[25].mxu1 }
0x19df   : > { %v2958_v52 = vadd.f32 %v2957_v49, %v4396_v56  ;;  %v3387_v56 = vld [vmem:[%s4663_s6 + $0x28] sm:$0xff] }
0x19e0   : > { %v3729_v31 = vpack.c.bf16 %v3387_v56, %v3386_v60 }
0x19e1   : > { %v4537_v53 = vadd.f32 %v3381_v51, %v2958_v52  ;;  %v3404_v52 = vld [vmem:[%s4726_s26] ss:$0 sm:$0xff]  ;;  %s3893_s26 = sshll.u32 %s3973_s25, 4  ;;  %s3894_s26 = int_to_ptr.vmem [resolvable:$false] %s3893_s26 }
0x19e2   : > { %3730 = vmatpush3.bf16.msra.mxu0 %v3729_v31  ;;  %s3895_s14 = scalar_lea.vmem %s3894_s26, 256  ;;  %p3896_p10 = scmp.lt.s32.totalorder %s4614_s29, %s3894_s26 }
0x19e3   : > { %v2972_v54 = vsel %vm555_vm0, %v4537_v53, 0.0  ;;  %3731 = vmatprep.subr.bf16.mxu0 %v3958_v10  ;;  %v3385_v10 = vld [vmem:[%s4670_s13 + $0x1] ss:$0 sm:$0xff]  ;;  %p3897_p2 = scmp.lt.s32.totalorder %s3895_s14, %s3889_s27 }
0x19e4   : > { %2973 = vadd.xlane.f32.xlu1 %v2972_v54 }
0x19e5   : > { %p3898_p4 = por %p3897_p2, %p3896_p10 }
0x19e6   : > { %3733 = vmatpush3.bf16.msra.mxu0 %v3732_v63 }
0x19e7   : > { %p3899_p5 = pnand %p3898_p4, %p3892_p7 }
0x1a71   : > { %v2974_v55 = vpop.xlane.xlu1 %2973 }
0x1a72   : > { %v2975_v57 = vmul.f32 0.03125, %v2974_v55  ;;  %v3405_v55 = vld [vmem:[%s4728_s0] ss:$0 sm:$0xff] }
0x1a74   : > { %v2976_v58 = vsub.f32 %v4537_v53, %v2975_v57 }
0x1a76   : > { %v2977_v13 = vmul.f32 %v2976_v58, %v2976_v58  ;;  %v2997_v20 = vmul.f32 %v3384_v19, %v2976_v58 }
0x1a78   : > { %v2978_v59 = vsel %vm555_vm0, %v2977_v13, 0.0 }
0x1a79   : > { %2979 = vadd.xlane.f32.xlu1 %v2978_v59 }
0x1b06   : > { %v2980_v11 = vpop.xlane.xlu1 %2979 }
0x1b07   : > { %v2981_v12 = vmul.f32 0.032258064, %v2980_v11 }
0x1b09   : > { %3851 = vrsqrt.f32 %v2981_v12  ;;  %vm2984_vm12 = vcmp.eq.f32.partialorder %v2981_v12, inf  ;;  %v2987_v15 = vand.u32 2147483648, %v2981_v12  ;;  %vm2986_vm13 = vcmp.eq.f32.partialorder %v2981_v12, 0.0 }
0x1b13   : > { %v3852_v14 = vpop.eup %3851 }
0x1b14   : > { %v2983_v0 = vmul.f32 %v3852_v14, %v2981_v12 }
0x1b16   : > { %v2985_v16 = vsel %vm2984_vm12, %v2981_v12, %v2983_v0 }
0x1b17   : > { %v2988_v17 = vsel %vm2986_vm13, %v2987_v15, %v2985_v16 }
0x1b18   : > { %v2989_v18 = vadd.f32 1e-06, %v2988_v17 }
0x1b1a   : > { %3853 = vrcp.f32 %v2989_v18 }
0x1b24   : > { %v3854_v21 = vpop.eup %3853 }
0x1b25   : > { %v2998_v23 = vmul.f32 %v3854_v21, %v2997_v20 }
0x1b27   : > { %v3005_v24 = vadd.f32 %v3385_v10, %v2998_v23 }
0x1b29   : > { %3677 = vmatmul.mubr.msk.f32.vlgmr.msra.gmra.mrb[30].mxu0 %vm555_vm0, %v3005_v24 }
0x1bfc   : > { %v3088_v29 = vpop.f32.mrb[30].mxu0 }
0x1bfd   : > { %v3089_v30 = vadd.f32 %v3391_v28, %v3088_v29  ;;  %v3678_v32 = vpop.f32.mrb[31].mxu0 }
0x1bff   : > { %v3092_v33 = vmax.f32 %v3089_v30, 0.0 }
0x1c01   : > { %3696 = vmatmul.mubr.msk.f32.vlgmr.msra.gmra.mrb[26].mxu1 %vm1793_vm9, %v3092_v33 }
0x1cd4   : > { %v3179_v35 = vpop.f32.mrb[26].mxu1 }
0x1cd5   : > { %v3180_v36 = vadd.f32 %v3402_v34, %v3179_v35  ;;  %v3697_v37 = vpop.f32.mrb[27].mxu1 }
0x1cd7   : > { %v3183_v38 = vadd.f32 %v3180_v36, %v4537_v53 }
0x1cd9   : > { %v3186_v39 = vsel %vm555_vm0, %v3183_v38, 0.0 }
0x1cda   : > { %3187 = vadd.xlane.f32.xlu1 %v3186_v39 }
0x1d67   : > { %v3188_v42 = vpop.xlane.xlu1 %3187 }
0x1d68   : > { %v3189_v22 = vmul.f32 0.03125, %v3188_v42 }
0x1d6a   : > { %v3190_v40 = vsub.f32 %v3183_v38, %v3189_v22 }
0x1d6c   : > { %v3191_v41 = vmul.f32 %v3190_v40, %v3190_v40  ;;  %v3211_v53 = vmul.f32 %v3404_v52, %v3190_v40 }
0x1d6e   : > { %v3192_v43 = vsel %vm555_vm0, %v3191_v41, 0.0 }
0x1d6f   : > { %3193 = vadd.xlane.f32.xlu1 %v3192_v43 }
0x1dfc   : > { %v3194_v44 = vpop.xlane.xlu1 %3193 }
0x1dfd   : > { %v3195_v45 = vmul.f32 0.032258064, %v3194_v44 }
0x1dff   : > { %3855 = vrsqrt.f32 %v3195_v45  ;;  %vm3198_vm14 = vcmp.eq.f32.partialorder %v3195_v45, inf  ;;  %v3201_v48 = vand.u32 2147483648, %v3195_v45  ;;  %vm3200_vm15 = vcmp.eq.f32.partialorder %v3195_v45, 0.0 }
0x1e09   : > { %v3856_v46 = vpop.eup %3855 }
0x1e0a   : > { %v3197_v47 = vmul.f32 %v3856_v46, %v3195_v45 }
0x1e0c   : > { %v3199_v49 = vsel %vm3198_vm14, %v3195_v45, %v3197_v47 }
0x1e0d   : > { %v3202_v50 = vsel %vm3200_vm15, %v3201_v48, %v3199_v49 }
0x1e0e   : > { %v3203_v51 = vadd.f32 1e-06, %v3202_v50 }
0x1e10   : > { %3857 = vrcp.f32 %v3203_v51 }
0x1e1a   : > { %v3858_v54 = vpop.eup %3857 }
0x1e1b   : > { %v3212_v57 = vmul.f32 %v3858_v54, %v3211_v53 }
0x1e1d   : > { %v3219_v58 = vadd.f32 %v3405_v55, %v3212_v57 }
0x1e1f   : > { %3220 = vst.msk [vmem:[%s547_s17] sm:$0xff] %vm555_vm0, %v3219_v58 }
0x1e20   : > { %3902 = shalt.err (!%p3899_p5)
}
0x1e21   : > { %s3903_s1 = scalar_lea.hbm %s4612_s4, 128  ;;  %s3907_s30 = scalar_lea.hbm %s4730_s3, 256 }
0x1e22   : > { %p3904_p8 = scmp.ne.s32.totalorder %s4612_s4, %s3903_s1  ;;  %p3908_p1 = scmp.lt.u32.totalorder %s4612_s4, %s4730_s3 }
0x1e23   : > { %p3909_p3 = scmp.lt.u32.totalorder %s3907_s30, %s3903_s1  ;;  %p3911_p11 = scmp.lt.u32.totalorder %s3903_s1, %s4612_s4 }
0x1e24   : > { %p3905_p9 = pnand %p3904_p8, %p4731_p12 }
0x1e25   : > { %p3910_p6 = por %p3909_p3, %p3908_p1 }
0x1e26   : > { %p3906_p0 = pneg %p3905_p9 }
0x1e27   : > { %p3912_p13 = por %p3911_p11, %p3910_p6 }
0x1e29   : > { %p3913_p7 = pnand %p3912_p13, %p3906_p0 }
0x1e2b   : > { %3916 = shalt.err (!%p3913_p7)
}
0x1e2c   : > { %3748 = dma.vmem_to_hbm [thread:$0]  (%p4731_p12), %s4614_s29, 128, %s4612_s4, %s3222_s15  }
0x1e2d PF: > { %s4732_s18 = sld [smem:[#allocation8_spill]]  ;;  %p4733_p10 = scmp.ne.s32.totalorder %s4707_s19, 0 }
0x1e2e   : > { %p4734_p2 = scmp.ge.s32.totalorder %s3955_s24, 2 }
0x1e30   : > { %p3755_p4 = pnand %p4734_p2, %p4733_p10 }
0x1e33   : > { %s3247_s17 = sand.u32 1, %s4732_s18  }
0x1e34   : > { %s3248_s27 = scalar_lea.sflag [#allocation4], %s3247_s17 }
0x1e35   : > { %3938 = dma.done.wait (!%p3755_p4), %s3248_s27, 128  }
0x1e36   : > { %3940 = vsyncadd (!%p3755_p4), %s3248_s27, 4294967168  ;;  %s4735_s24 = sld [smem:[#allocation9_spill]]  ;;  %s4736_s25 = sld [smem:[#allocation10_spill]] }
0x1e37   : > { %s4737_s21 = smov %s3947_s22  ;;  %s4738_s22 = smov %s3951_s23 }
0x1e3c   : > { %p29_p5 = scmp.ge.s32.totalorder %s4735_s24, 4   ;;  %s4739_s23 = smov %s4736_s25 }
0x1e3e   :  { %31 = sbr.rel (!%p29_p5) target bundleno = 14 (0xe), region = 144 }
0x1e45   :  { %3253 = vsyncpa [#allocation3], 1 }
0x1e46   :  { %3255 = vsyncpa [#allocation3 + $0x1], 1 }
0x1e47   :  { %3256 = vsyncpa [#allocation4], 1 }
0x1e48   :  { %3258 = vsyncpa [#allocation4 + $0x1], 1 }

</bundles_post_ra>
